<compile_context>
chip_gen: v5e
topology: v5e:2x2
jax: 0.10.0
libtpu: 0.0.40
codegen_flags: <defaults>
</compile_context>

<pallas_src>
import math
import jax
import jax.numpy as jnp
from jax.experimental import pallas as pl
from jax.experimental.pallas import tpu as pltpu  # noqa: F401  (TPU backend / future tuning)

# ---- config (small, consistent with the module) ----
BATCH = 2
SEQ = 8
D_MODEL = 32
NUM_HEADS = 4
HEAD_DIM = D_MODEL // NUM_HEADS
DFF = 64
NUM_LAYERS = 2
EPS = 1e-5  # nn.LayerNorm default


def _layernorm(x, gamma, beta):
    mu = jnp.mean(x, axis=-1, keepdims=True)
    var = jnp.mean((x - mu) ** 2, axis=-1, keepdims=True)
    return (x - mu) * jax.lax.rsqrt(var + EPS) * gamma + beta


def encoder_kernel(x_ref, wq_ref, wk_ref, wv_ref, wo_ref, w1_ref, w2_ref,
                   sp_ref, b1_ref, fn_ref, out_ref):
    """Entire encoder (all layers + final norm) in a single kernel invocation.

    x_ref : (B*L, D)            activations, flattened over (batch, seq)
    wq/wk/wv/wo_ref : (NL,D,D)  attention projection weights, stacked over layers
    w1_ref : (NL, D, DFF)       FFN first linear
    w2_ref : (NL, DFF, D)       FFN second linear
    sp_ref : (NL, 9, D)         packed small params: bq,bk,bv,bo,b2,n1g,n1b,n2g,n2b
    b1_ref : (NL, 1, DFF)       FFN first bias
    fn_ref : (2, D)             final LayerNorm gamma / beta
    """
    x = x_ref[...]                          # (B*L, D) -- stays resident across layers
    scale = 1.0 / math.sqrt(HEAD_DIM)

    for l in range(NUM_LAYERS):             # static unroll over layers
        wq, wk, wv, wo = wq_ref[l], wk_ref[l], wv_ref[l], wo_ref[l]
        w1, w2 = w1_ref[l], w2_ref[l]
        sp = sp_ref[l]                      # (9, D)
        bq, bk, bv, bo = sp[0:1], sp[1:2], sp[2:3], sp[3:4]
        b2 = sp[4:5]
        n1g, n1b = sp[5:6], sp[6:7]
        n2g, n2b = sp[7:8], sp[8:9]
        b1 = b1_ref[l]                      # (1, DFF)

        # --- AttentionLayer projections on the flattened (B*L, D) slab ---
        q = jnp.dot(x, wq, preferred_element_type=jnp.float32) + bq
        k = jnp.dot(x, wk, preferred_element_type=jnp.float32) + bk
        v = jnp.dot(x, wv, preferred_element_type=jnp.float32) + bv

        # leading-dim split only (lane/minor dim untouched) -> cheap, safe reshape
        q3 = q.reshape(BATCH, SEQ, D_MODEL)
        k3 = k.reshape(BATCH, SEQ, D_MODEL)
        v3 = v.reshape(BATCH, SEQ, D_MODEL)

        # --- FullAttention: softmax(scale * Q K^T) V, batched over B for each head ---
        ctx_parts = []
        for h in range(NUM_HEADS):
            lo = h * HEAD_DIM
            hi = lo + HEAD_DIM
            qh = q3[:, :, lo:hi]            # (B, L, E)
            kh = k3[:, :, lo:hi]
            vh = v3[:, :, lo:hi]
            s = jnp.einsum('ble,bse->bls', qh, kh,
                           preferred_element_type=jnp.float32) * scale
            s = s - jnp.max(s, axis=-1, keepdims=True)
            p = jnp.exp(s)
            p = p * pl.reciprocal(jnp.sum(p, axis=-1, keepdims=True))  # exact; approx=True -> EUP
            ctx_parts.append(jnp.einsum('bls,bse->ble', p, vh,
                                        preferred_element_type=jnp.float32))
        ctx = jnp.concatenate(ctx_parts, axis=-1).reshape(BATCH * SEQ, D_MODEL)

        attn_out = jnp.dot(ctx, wo, preferred_element_type=jnp.float32) + bo

        # residual + dropout(=identity) + norm1
        h1 = _layernorm(x + attn_out, n1g, n1b)

        # FFN: relu(h1 W1 + b1) W2 + b2   (dropout = identity)
        ff = jnp.maximum(jnp.dot(h1, w1, preferred_element_type=jnp.float32) + b1, 0.0)
        ff = jnp.dot(ff, w2, preferred_element_type=jnp.float32) + b2

        # residual + norm2
        x = _layernorm(h1 + ff, n2g, n2b)

    # final Encoder.norm
    fn = fn_ref[...]
    out_ref[...] = _layernorm(x, fn[0:1], fn[1:2])


def encoder_forward(enc_embeds, params):
    """Mirrors Encoder.forward (padding_mask=None, attn_mask=None). Single fused pallas_call."""
    B, L, D = enc_embeds.shape
    pk = params["packed"]
    x2 = enc_embeds.reshape(B * L, D)       # flatten (batch, seq) outside the kernel
    out = pl.pallas_call(
        encoder_kernel,
        out_shape=jax.ShapeDtypeStruct((B * L, D), jnp.float32),
    )(x2, pk["wq"], pk["wk"], pk["wv"], pk["wo"],
      pk["w1"], pk["w2"], pk["small"], pk["b1"], pk["fnorm"])
    attns = [None] * NUM_LAYERS             # output_attention=False
    return out.reshape(B, L, D), attns


# ---- parameter packing for the fused kernel ----
def pack_params(params):
    layers = params["layers"]

    def stack(i):
        return jnp.stack([lp[i] for lp in layers])

    # layer tuple: (wq,bq,wk,bk,wv,bv,wo,bo,n1g,n1b,w1,b1,w2,b2,n2g,n2b)
    small = jnp.stack([
        jnp.concatenate([lp[i] for i in (1, 3, 5, 7, 13, 8, 9, 14, 15)], axis=0)
        for lp in layers])                                   # (NL, 9, D)
    return {
        "wq": stack(0), "wk": stack(2), "wv": stack(4), "wo": stack(6),
        "w1": stack(10), "w2": stack(12),
        "small": small,
        "b1": stack(11),                                     # (NL, 1, DFF)
        "fnorm": jnp.concatenate([params["norm_g"], params["norm_b"]], axis=0),  # (2, D)
    }


# ---- pure-JAX reference for verification ----
def encoder_forward_ref(x, params):
    def ln(x, g, b):
        mu = jnp.mean(x, axis=-1, keepdims=True)
        var = jnp.mean((x - mu) ** 2, axis=-1, keepdims=True)
        return (x - mu) / jnp.sqrt(var + EPS) * g + b

    for (wq, bq, wk, bk, wv, bv, wo, bo, n1g, n1b, w1, b1, w2, b2, n2g, n2b) in params["layers"]:
        q = x @ wq + bq
        k = x @ wk + bk
        v = x @ wv + bv
        B, L, _ = x.shape
        qh = q.reshape(B, L, NUM_HEADS, HEAD_DIM)
        kh = k.reshape(B, L, NUM_HEADS, HEAD_DIM)
        vh = v.reshape(B, L, NUM_HEADS, HEAD_DIM)
        scores = jnp.einsum("blhe,bshe->bhls", qh, kh) / math.sqrt(HEAD_DIM)
        p = jax.nn.softmax(scores, axis=-1)
        ctx = jnp.einsum("bhls,bshd->blhd", p, vh).reshape(B, L, D_MODEL)
        attn_out = ctx @ wo + bo
        h1 = ln(x + attn_out, n1g, n1b)
        ff = jnp.maximum(h1 @ w1 + b1, 0.0) @ w2 + b2
        x = ln(h1 + ff, n2g, n2b)
    return ln(x, params["norm_g"], params["norm_b"])


def init_params(key):
    layers = []
    for _ in range(NUM_LAYERS):
        keys = jax.random.split(key, 9)
        key = keys[0]
        s = 0.1
        wq = jax.random.normal(keys[1], (D_MODEL, D_MODEL), jnp.float32) * s
        wk = jax.random.normal(keys[2], (D_MODEL, D_MODEL), jnp.float32) * s
        wv = jax.random.normal(keys[3], (D_MODEL, D_MODEL), jnp.float32) * s
        wo = jax.random.normal(keys[4], (D_MODEL, D_MODEL), jnp.float32) * s
        w1 = jax.random.normal(keys[5], (D_MODEL, DFF), jnp.float32) * s
        w2 = jax.random.normal(keys[6], (DFF, D_MODEL), jnp.float32) * s
        bq = jax.random.normal(keys[7], (1, D_MODEL), jnp.float32) * s
        bk = jnp.zeros((1, D_MODEL), jnp.float32)
        bv = jnp.zeros((1, D_MODEL), jnp.float32)
        bo = jax.random.normal(keys[8], (1, D_MODEL), jnp.float32) * s
        b1 = jnp.zeros((1, DFF), jnp.float32)
        b2 = jnp.zeros((1, D_MODEL), jnp.float32)
        n1g = jnp.ones((1, D_MODEL), jnp.float32)
        n1b = jnp.zeros((1, D_MODEL), jnp.float32)
        n2g = jnp.ones((1, D_MODEL), jnp.float32)
        n2b = jnp.zeros((1, D_MODEL), jnp.float32)
        layers.append((wq, bq, wk, bk, wv, bv, wo, bo,
                       n1g, n1b, w1, b1, w2, b2, n2g, n2b))
    return {"layers": layers,
            "norm_g": jnp.ones((1, D_MODEL), jnp.float32),
            "norm_b": jnp.zeros((1, D_MODEL), jnp.float32)}


if __name__ == "__main__":
    key = jax.random.PRNGKey(0)
    k_x, k_p = jax.random.split(key)
    x = jax.random.normal(k_x, (BATCH, SEQ, D_MODEL), jnp.float32)
    params = init_params(k_p)
    params["packed"] = pack_params(params)

    out, attns = encoder_forward(x, params)
    out = jax.block_until_ready(out)

    ref = encoder_forward_ref(x, params)
    assert out.shape == (BATCH, SEQ, D_MODEL)
    assert len(attns) == NUM_LAYERS and all(a is None for a in attns)
    assert jnp.allclose(out, ref, atol=1e-4, rtol=1e-4), "mismatch vs reference"
    print("KERNEL_OK")
</pallas_src>

<mosaic_0001>
module attributes {stable_mosaic.version = 11 : i64} {
  func.func @encoder_kernel(%arg0: memref<16x32xf32, #tpu.memory_space<vmem>>, %arg1: memref<2x32x32xf32, #tpu.memory_space<vmem>>, %arg2: memref<2x32x32xf32, #tpu.memory_space<vmem>>, %arg3: memref<2x32x32xf32, #tpu.memory_space<vmem>>, %arg4: memref<2x32x32xf32, #tpu.memory_space<vmem>>, %arg5: memref<2x32x64xf32, #tpu.memory_space<vmem>>, %arg6: memref<2x64x32xf32, #tpu.memory_space<vmem>>, %arg7: memref<2x9x32xf32, #tpu.memory_space<vmem>>, %arg8: memref<2x1x64xf32, #tpu.memory_space<vmem>>, %arg9: memref<2x32xf32, #tpu.memory_space<vmem>>, %arg10: memref<16x32xf32, #tpu.memory_space<vmem>>) attributes {dimension_semantics = [], scalar_prefetch = 0 : i64, scratch_operands = 0 : i64, tpu.core_type = #tpu.core_type<tc>} {
    %c0 = arith.constant 0 : index
    %c0_0 = arith.constant 0 : index
    %0 = vector.load %arg0[%c0, %c0_0] : memref<16x32xf32, #tpu.memory_space<vmem>>, vector<16x32xf32>
    %c0_1 = arith.constant 0 : index
    %c0_2 = arith.constant 0 : index
    %c0_3 = arith.constant 0 : index
    %1 = vector.load %arg1[%c0_1, %c0_2, %c0_3] : memref<2x32x32xf32, #tpu.memory_space<vmem>>, vector<1x32x32xf32>
    %2 = vector.shape_cast %1 : vector<1x32x32xf32> to vector<32x32xf32>
    %c0_4 = arith.constant 0 : index
    %c0_5 = arith.constant 0 : index
    %c0_6 = arith.constant 0 : index
    %3 = vector.load %arg2[%c0_4, %c0_5, %c0_6] : memref<2x32x32xf32, #tpu.memory_space<vmem>>, vector<1x32x32xf32>
    %4 = vector.shape_cast %3 : vector<1x32x32xf32> to vector<32x32xf32>
    %c0_7 = arith.constant 0 : index
    %c0_8 = arith.constant 0 : index
    %c0_9 = arith.constant 0 : index
    %5 = vector.load %arg3[%c0_7, %c0_8, %c0_9] : memref<2x32x32xf32, #tpu.memory_space<vmem>>, vector<1x32x32xf32>
    %6 = vector.shape_cast %5 : vector<1x32x32xf32> to vector<32x32xf32>
    %c0_10 = arith.constant 0 : index
    %c0_11 = arith.constant 0 : index
    %c0_12 = arith.constant 0 : index
    %7 = vector.load %arg4[%c0_10, %c0_11, %c0_12] : memref<2x32x32xf32, #tpu.memory_space<vmem>>, vector<1x32x32xf32>
    %8 = vector.shape_cast %7 : vector<1x32x32xf32> to vector<32x32xf32>
    %c0_13 = arith.constant 0 : index
    %c0_14 = arith.constant 0 : index
    %c0_15 = arith.constant 0 : index
    %9 = vector.load %arg5[%c0_13, %c0_14, %c0_15] : memref<2x32x64xf32, #tpu.memory_space<vmem>>, vector<1x32x64xf32>
    %10 = vector.shape_cast %9 : vector<1x32x64xf32> to vector<32x64xf32>
    %c0_16 = arith.constant 0 : index
    %c0_17 = arith.constant 0 : index
    %c0_18 = arith.constant 0 : index
    %11 = vector.load %arg6[%c0_16, %c0_17, %c0_18] : memref<2x64x32xf32, #tpu.memory_space<vmem>>, vector<1x64x32xf32>
    %12 = vector.shape_cast %11 : vector<1x64x32xf32> to vector<64x32xf32>
    %c0_19 = arith.constant 0 : index
    %c0_20 = arith.constant 0 : index
    %c0_21 = arith.constant 0 : index
    %13 = vector.load %arg7[%c0_19, %c0_20, %c0_21] : memref<2x9x32xf32, #tpu.memory_space<vmem>>, vector<1x9x32xf32>
    %14 = vector.shape_cast %13 : vector<1x9x32xf32> to vector<9x32xf32>
    %15 = vector.extract_strided_slice %14 {offsets = [0, 0], sizes = [1, 32], strides = [1, 1]} : vector<9x32xf32> to vector<1x32xf32>
    %16 = vector.extract_strided_slice %14 {offsets = [1, 0], sizes = [1, 32], strides = [1, 1]} : vector<9x32xf32> to vector<1x32xf32>
    %17 = vector.extract_strided_slice %14 {offsets = [2, 0], sizes = [1, 32], strides = [1, 1]} : vector<9x32xf32> to vector<1x32xf32>
    %18 = vector.extract_strided_slice %14 {offsets = [3, 0], sizes = [1, 32], strides = [1, 1]} : vector<9x32xf32> to vector<1x32xf32>
    %19 = vector.extract_strided_slice %14 {offsets = [4, 0], sizes = [1, 32], strides = [1, 1]} : vector<9x32xf32> to vector<1x32xf32>
    %20 = vector.extract_strided_slice %14 {offsets = [5, 0], sizes = [1, 32], strides = [1, 1]} : vector<9x32xf32> to vector<1x32xf32>
    %21 = vector.extract_strided_slice %14 {offsets = [6, 0], sizes = [1, 32], strides = [1, 1]} : vector<9x32xf32> to vector<1x32xf32>
    %22 = vector.extract_strided_slice %14 {offsets = [7, 0], sizes = [1, 32], strides = [1, 1]} : vector<9x32xf32> to vector<1x32xf32>
    %23 = vector.extract_strided_slice %14 {offsets = [8, 0], sizes = [1, 32], strides = [1, 1]} : vector<9x32xf32> to vector<1x32xf32>
    %c0_22 = arith.constant 0 : index
    %c0_23 = arith.constant 0 : index
    %c0_24 = arith.constant 0 : index
    %24 = vector.load %arg8[%c0_22, %c0_23, %c0_24] : memref<2x1x64xf32, #tpu.memory_space<vmem>>, vector<1x1x64xf32>
    %25 = vector.shape_cast %24 : vector<1x1x64xf32> to vector<1x64xf32>
    %cst = arith.constant dense<0.000000e+00> : vector<16x32xf32>
    %26 = tpu.matmul %0, %2, %cst {dimension_numbers = #tpu.dot_dimension_numbers<[1], [0], [0], [1], [0, 0, 1, 1], [], []>} : vector<16x32xf32>, vector<32x32xf32>, vector<16x32xf32> -> vector<16x32xf32>
    %27 = vector.broadcast %15 : vector<1x32xf32> to vector<16x32xf32>
    %28 = arith.addf %26, %27 : vector<16x32xf32>
    %cst_25 = arith.constant dense<0.000000e+00> : vector<16x32xf32>
    %29 = tpu.matmul %0, %4, %cst_25 {dimension_numbers = #tpu.dot_dimension_numbers<[1], [0], [0], [1], [0, 0, 1, 1], [], []>} : vector<16x32xf32>, vector<32x32xf32>, vector<16x32xf32> -> vector<16x32xf32>
    %30 = vector.broadcast %16 : vector<1x32xf32> to vector<16x32xf32>
    %31 = arith.addf %29, %30 : vector<16x32xf32>
    %cst_26 = arith.constant dense<0.000000e+00> : vector<16x32xf32>
    %32 = tpu.matmul %0, %6, %cst_26 {dimension_numbers = #tpu.dot_dimension_numbers<[1], [0], [0], [1], [0, 0, 1, 1], [], []>} : vector<16x32xf32>, vector<32x32xf32>, vector<16x32xf32> -> vector<16x32xf32>
    %33 = vector.broadcast %17 : vector<1x32xf32> to vector<16x32xf32>
    %34 = arith.addf %32, %33 : vector<16x32xf32>
    %35 = vector.shape_cast %28 : vector<16x32xf32> to vector<2x8x32xf32>
    %36 = vector.shape_cast %31 : vector<16x32xf32> to vector<2x8x32xf32>
    %37 = vector.shape_cast %34 : vector<16x32xf32> to vector<2x8x32xf32>
    %38 = vector.extract_strided_slice %35 {offsets = [0, 0, 0], sizes = [2, 8, 8], strides = [1, 1, 1]} : vector<2x8x32xf32> to vector<2x8x8xf32>
    %39 = vector.extract_strided_slice %36 {offsets = [0, 0, 0], sizes = [2, 8, 8], strides = [1, 1, 1]} : vector<2x8x32xf32> to vector<2x8x8xf32>
    %40 = vector.extract_strided_slice %37 {offsets = [0, 0, 0], sizes = [2, 8, 8], strides = [1, 1, 1]} : vector<2x8x32xf32> to vector<2x8x8xf32>
    "tpu.trace_start"() <{level = 10 : i32, message = "ble,bse->bls"}> : () -> ()
    %cst_27 = arith.constant dense<0.000000e+00> : vector<2x8x8xf32>
    %41 = tpu.matmul %38, %39, %cst_27 {dimension_numbers = #tpu.dot_dimension_numbers<[2], [2], [1], [1], [0, 0, 0, 1, 1, 1], [0], [0]>} : vector<2x8x8xf32>, vector<2x8x8xf32>, vector<2x8x8xf32> -> vector<2x8x8xf32>
    "tpu.trace_stop"() : () -> ()
    %cst_28 = arith.constant 0.353553385 : f32
    %42 = vector.broadcast %cst_28 : f32 to vector<2x8x8xf32>
    %43 = arith.mulf %41, %42 : vector<2x8x8xf32>
    %cst_29 = arith.constant dense<0xFF800000> : vector<2x8xf32>
    %44 = vector.multi_reduction <maximumf>, %43, %cst_29 [2] : vector<2x8x8xf32> to vector<2x8xf32>
    %45 = vector.shape_cast %44 : vector<2x8xf32> to vector<2x8x1xf32>
    %46 = vector.broadcast %45 : vector<2x8x1xf32> to vector<2x8x8xf32>
    %47 = arith.subf %43, %46 : vector<2x8x8xf32>
    %48 = math.exp %47 : vector<2x8x8xf32>
    %cst_30 = arith.constant dense<0.000000e+00> : vector<2x8xf32>
    %49 = vector.multi_reduction <add>, %48, %cst_30 [2] : vector<2x8x8xf32> to vector<2x8xf32>
    %50 = vector.shape_cast %49 : vector<2x8xf32> to vector<2x8x1xf32>
    %51 = tpu.reciprocal %50 : vector<2x8x1xf32> -> vector<2x8x1xf32>
    %52 = vector.broadcast %51 : vector<2x8x1xf32> to vector<2x8x8xf32>
    %53 = arith.mulf %48, %52 : vector<2x8x8xf32>
    "tpu.trace_start"() <{level = 10 : i32, message = "bls,bse->ble"}> : () -> ()
    %cst_31 = arith.constant dense<0.000000e+00> : vector<2x8x8xf32>
    %54 = tpu.matmul %53, %40, %cst_31 {dimension_numbers = #tpu.dot_dimension_numbers<[2], [1], [1], [2], [0, 0, 0, 1, 1, 2], [0], [0]>} : vector<2x8x8xf32>, vector<2x8x8xf32>, vector<2x8x8xf32> -> vector<2x8x8xf32>
    "tpu.trace_stop"() : () -> ()
    %55 = vector.extract_strided_slice %35 {offsets = [0, 0, 8], sizes = [2, 8, 8], strides = [1, 1, 1]} : vector<2x8x32xf32> to vector<2x8x8xf32>
    %56 = vector.extract_strided_slice %36 {offsets = [0, 0, 8], sizes = [2, 8, 8], strides = [1, 1, 1]} : vector<2x8x32xf32> to vector<2x8x8xf32>
    %57 = vector.extract_strided_slice %37 {offsets = [0, 0, 8], sizes = [2, 8, 8], strides = [1, 1, 1]} : vector<2x8x32xf32> to vector<2x8x8xf32>
    "tpu.trace_start"() <{level = 10 : i32, message = "ble,bse->bls"}> : () -> ()
    %cst_32 = arith.constant dense<0.000000e+00> : vector<2x8x8xf32>
    %58 = tpu.matmul %55, %56, %cst_32 {dimension_numbers = #tpu.dot_dimension_numbers<[2], [2], [1], [1], [0, 0, 0, 1, 1, 1], [0], [0]>} : vector<2x8x8xf32>, vector<2x8x8xf32>, vector<2x8x8xf32> -> vector<2x8x8xf32>
    "tpu.trace_stop"() : () -> ()
    %cst_33 = arith.constant 0.353553385 : f32
    %59 = vector.broadcast %cst_33 : f32 to vector<2x8x8xf32>
    %60 = arith.mulf %58, %59 : vector<2x8x8xf32>
    %cst_34 = arith.constant dense<0xFF800000> : vector<2x8xf32>
    %61 = vector.multi_reduction <maximumf>, %60, %cst_34 [2] : vector<2x8x8xf32> to vector<2x8xf32>
    %62 = vector.shape_cast %61 : vector<2x8xf32> to vector<2x8x1xf32>
    %63 = vector.broadcast %62 : vector<2x8x1xf32> to vector<2x8x8xf32>
    %64 = arith.subf %60, %63 : vector<2x8x8xf32>
    %65 = math.exp %64 : vector<2x8x8xf32>
    %cst_35 = arith.constant dense<0.000000e+00> : vector<2x8xf32>
    %66 = vector.multi_reduction <add>, %65, %cst_35 [2] : vector<2x8x8xf32> to vector<2x8xf32>
    %67 = vector.shape_cast %66 : vector<2x8xf32> to vector<2x8x1xf32>
    %68 = tpu.reciprocal %67 : vector<2x8x1xf32> -> vector<2x8x1xf32>
    %69 = vector.broadcast %68 : vector<2x8x1xf32> to vector<2x8x8xf32>
    %70 = arith.mulf %65, %69 : vector<2x8x8xf32>
    "tpu.trace_start"() <{level = 10 : i32, message = "bls,bse->ble"}> : () -> ()
    %cst_36 = arith.constant dense<0.000000e+00> : vector<2x8x8xf32>
    %71 = tpu.matmul %70, %57, %cst_36 {dimension_numbers = #tpu.dot_dimension_numbers<[2], [1], [1], [2], [0, 0, 0, 1, 1, 2], [0], [0]>} : vector<2x8x8xf32>, vector<2x8x8xf32>, vector<2x8x8xf32> -> vector<2x8x8xf32>
    "tpu.trace_stop"() : () -> ()
    %72 = vector.extract_strided_slice %35 {offsets = [0, 0, 16], sizes = [2, 8, 8], strides = [1, 1, 1]} : vector<2x8x32xf32> to vector<2x8x8xf32>
    %73 = vector.extract_strided_slice %36 {offsets = [0, 0, 16], sizes = [2, 8, 8], strides = [1, 1, 1]} : vector<2x8x32xf32> to vector<2x8x8xf32>
    %74 = vector.extract_strided_slice %37 {offsets = [0, 0, 16], sizes = [2, 8, 8], strides = [1, 1, 1]} : vector<2x8x32xf32> to vector<2x8x8xf32>
    "tpu.trace_start"() <{level = 10 : i32, message = "ble,bse->bls"}> : () -> ()
    %cst_37 = arith.constant dense<0.000000e+00> : vector<2x8x8xf32>
    %75 = tpu.matmul %72, %73, %cst_37 {dimension_numbers = #tpu.dot_dimension_numbers<[2], [2], [1], [1], [0, 0, 0, 1, 1, 1], [0], [0]>} : vector<2x8x8xf32>, vector<2x8x8xf32>, vector<2x8x8xf32> -> vector<2x8x8xf32>
    "tpu.trace_stop"() : () -> ()
    %cst_38 = arith.constant 0.353553385 : f32
    %76 = vector.broadcast %cst_38 : f32 to vector<2x8x8xf32>
    %77 = arith.mulf %75, %76 : vector<2x8x8xf32>
    %cst_39 = arith.constant dense<0xFF800000> : vector<2x8xf32>
    %78 = vector.multi_reduction <maximumf>, %77, %cst_39 [2] : vector<2x8x8xf32> to vector<2x8xf32>
    %79 = vector.shape_cast %78 : vector<2x8xf32> to vector<2x8x1xf32>
    %80 = vector.broadcast %79 : vector<2x8x1xf32> to vector<2x8x8xf32>
    %81 = arith.subf %77, %80 : vector<2x8x8xf32>
    %82 = math.exp %81 : vector<2x8x8xf32>
    %cst_40 = arith.constant dense<0.000000e+00> : vector<2x8xf32>
    %83 = vector.multi_reduction <add>, %82, %cst_40 [2] : vector<2x8x8xf32> to vector<2x8xf32>
    %84 = vector.shape_cast %83 : vector<2x8xf32> to vector<2x8x1xf32>
    %85 = tpu.reciprocal %84 : vector<2x8x1xf32> -> vector<2x8x1xf32>
    %86 = vector.broadcast %85 : vector<2x8x1xf32> to vector<2x8x8xf32>
    %87 = arith.mulf %82, %86 : vector<2x8x8xf32>
    "tpu.trace_start"() <{level = 10 : i32, message = "bls,bse->ble"}> : () -> ()
    %cst_41 = arith.constant dense<0.000000e+00> : vector<2x8x8xf32>
    %88 = tpu.matmul %87, %74, %cst_41 {dimension_numbers = #tpu.dot_dimension_numbers<[2], [1], [1], [2], [0, 0, 0, 1, 1, 2], [0], [0]>} : vector<2x8x8xf32>, vector<2x8x8xf32>, vector<2x8x8xf32> -> vector<2x8x8xf32>
    "tpu.trace_stop"() : () -> ()
    %89 = vector.extract_strided_slice %35 {offsets = [0, 0, 24], sizes = [2, 8, 8], strides = [1, 1, 1]} : vector<2x8x32xf32> to vector<2x8x8xf32>
    %90 = vector.extract_strided_slice %36 {offsets = [0, 0, 24], sizes = [2, 8, 8], strides = [1, 1, 1]} : vector<2x8x32xf32> to vector<2x8x8xf32>
    %91 = vector.extract_strided_slice %37 {offsets = [0, 0, 24], sizes = [2, 8, 8], strides = [1, 1, 1]} : vector<2x8x32xf32> to vector<2x8x8xf32>
    "tpu.trace_start"() <{level = 10 : i32, message = "ble,bse->bls"}> : () -> ()
    %cst_42 = arith.constant dense<0.000000e+00> : vector<2x8x8xf32>
    %92 = tpu.matmul %89, %90, %cst_42 {dimension_numbers = #tpu.dot_dimension_numbers<[2], [2], [1], [1], [0, 0, 0, 1, 1, 1], [0], [0]>} : vector<2x8x8xf32>, vector<2x8x8xf32>, vector<2x8x8xf32> -> vector<2x8x8xf32>
    "tpu.trace_stop"() : () -> ()
    %cst_43 = arith.constant 0.353553385 : f32
    %93 = vector.broadcast %cst_43 : f32 to vector<2x8x8xf32>
    %94 = arith.mulf %92, %93 : vector<2x8x8xf32>
    %cst_44 = arith.constant dense<0xFF800000> : vector<2x8xf32>
    %95 = vector.multi_reduction <maximumf>, %94, %cst_44 [2] : vector<2x8x8xf32> to vector<2x8xf32>
    %96 = vector.shape_cast %95 : vector<2x8xf32> to vector<2x8x1xf32>
    %97 = vector.broadcast %96 : vector<2x8x1xf32> to vector<2x8x8xf32>
    %98 = arith.subf %94, %97 : vector<2x8x8xf32>
    %99 = math.exp %98 : vector<2x8x8xf32>
    %cst_45 = arith.constant dense<0.000000e+00> : vector<2x8xf32>
    %100 = vector.multi_reduction <add>, %99, %cst_45 [2] : vector<2x8x8xf32> to vector<2x8xf32>
    %101 = vector.shape_cast %100 : vector<2x8xf32> to vector<2x8x1xf32>
    %102 = tpu.reciprocal %101 : vector<2x8x1xf32> -> vector<2x8x1xf32>
    %103 = vector.broadcast %102 : vector<2x8x1xf32> to vector<2x8x8xf32>
    %104 = arith.mulf %99, %103 : vector<2x8x8xf32>
    "tpu.trace_start"() <{level = 10 : i32, message = "bls,bse->ble"}> : () -> ()
    %cst_46 = arith.constant dense<0.000000e+00> : vector<2x8x8xf32>
    %105 = tpu.matmul %104, %91, %cst_46 {dimension_numbers = #tpu.dot_dimension_numbers<[2], [1], [1], [2], [0, 0, 0, 1, 1, 2], [0], [0]>} : vector<2x8x8xf32>, vector<2x8x8xf32>, vector<2x8x8xf32> -> vector<2x8x8xf32>
    "tpu.trace_stop"() : () -> ()
    %106 = tpu.concatenate %54, %71, %88, %105 in 2 : vector<2x8x8xf32>, vector<2x8x8xf32>, vector<2x8x8xf32>, vector<2x8x8xf32> -> vector<2x8x32xf32>
    %107 = vector.shape_cast %106 : vector<2x8x32xf32> to vector<16x32xf32>
    %cst_47 = arith.constant dense<0.000000e+00> : vector<16x32xf32>
    %108 = tpu.matmul %107, %8, %cst_47 {dimension_numbers = #tpu.dot_dimension_numbers<[1], [0], [0], [1], [0, 0, 1, 1], [], []>} : vector<16x32xf32>, vector<32x32xf32>, vector<16x32xf32> -> vector<16x32xf32>
    %109 = vector.broadcast %18 : vector<1x32xf32> to vector<16x32xf32>
    %110 = arith.addf %108, %109 : vector<16x32xf32>
    %111 = arith.addf %0, %110 : vector<16x32xf32>
    %cst_48 = arith.constant dense<0.000000e+00> : vector<16xf32>
    %112 = vector.multi_reduction <add>, %111, %cst_48 [1] : vector<16x32xf32> to vector<16xf32>
    %113 = vector.shape_cast %112 : vector<16xf32> to vector<16x1xf32>
    %cst_49 = arith.constant 3.200000e+01 : f32
    %114 = vector.broadcast %cst_49 : f32 to vector<16x1xf32>
    %115 = arith.divf %113, %114 : vector<16x1xf32>
    %116 = vector.broadcast %115 : vector<16x1xf32> to vector<16x32xf32>
    %117 = arith.subf %111, %116 : vector<16x32xf32>
    %118 = arith.mulf %117, %117 : vector<16x32xf32>
    %cst_50 = arith.constant dense<0.000000e+00> : vector<16xf32>
    %119 = vector.multi_reduction <add>, %118, %cst_50 [1] : vector<16x32xf32> to vector<16xf32>
    %120 = vector.shape_cast %119 : vector<16xf32> to vector<16x1xf32>
    %cst_51 = arith.constant 3.200000e+01 : f32
    %121 = vector.broadcast %cst_51 : f32 to vector<16x1xf32>
    %122 = arith.divf %120, %121 : vector<16x1xf32>
    %123 = vector.broadcast %115 : vector<16x1xf32> to vector<16x32xf32>
    %124 = arith.subf %111, %123 : vector<16x32xf32>
    %cst_52 = arith.constant 9.99999974E-6 : f32
    %125 = vector.broadcast %cst_52 : f32 to vector<16x1xf32>
    %126 = arith.addf %122, %125 : vector<16x1xf32>
    %127 = math.rsqrt %126 : vector<16x1xf32>
    %128 = vector.broadcast %127 : vector<16x1xf32> to vector<16x32xf32>
    %129 = arith.mulf %124, %128 : vector<16x32xf32>
    %130 = vector.broadcast %20 : vector<1x32xf32> to vector<16x32xf32>
    %131 = arith.mulf %129, %130 : vector<16x32xf32>
    %132 = vector.broadcast %21 : vector<1x32xf32> to vector<16x32xf32>
    %133 = arith.addf %131, %132 : vector<16x32xf32>
    %cst_53 = arith.constant dense<0.000000e+00> : vector<16x64xf32>
    %134 = tpu.matmul %133, %10, %cst_53 {dimension_numbers = #tpu.dot_dimension_numbers<[1], [0], [0], [1], [0, 0, 1, 1], [], []>} : vector<16x32xf32>, vector<32x64xf32>, vector<16x64xf32> -> vector<16x64xf32>
    %135 = vector.broadcast %25 : vector<1x64xf32> to vector<16x64xf32>
    %136 = arith.addf %134, %135 : vector<16x64xf32>
    %cst_54 = arith.constant 0.000000e+00 : f32
    %137 = vector.broadcast %cst_54 : f32 to vector<16x64xf32>
    %138 = arith.maximumf %136, %137 : vector<16x64xf32>
    %cst_55 = arith.constant dense<0.000000e+00> : vector<16x32xf32>
    %139 = tpu.matmul %138, %12, %cst_55 {dimension_numbers = #tpu.dot_dimension_numbers<[1], [0], [0], [1], [0, 0, 1, 1], [], []>} : vector<16x64xf32>, vector<64x32xf32>, vector<16x32xf32> -> vector<16x32xf32>
    %140 = vector.broadcast %19 : vector<1x32xf32> to vector<16x32xf32>
    %141 = arith.addf %139, %140 : vector<16x32xf32>
    %142 = arith.addf %133, %141 : vector<16x32xf32>
    %cst_56 = arith.constant dense<0.000000e+00> : vector<16xf32>
    %143 = vector.multi_reduction <add>, %142, %cst_56 [1] : vector<16x32xf32> to vector<16xf32>
    %144 = vector.shape_cast %143 : vector<16xf32> to vector<16x1xf32>
    %cst_57 = arith.constant 3.200000e+01 : f32
    %145 = vector.broadcast %cst_57 : f32 to vector<16x1xf32>
    %146 = arith.divf %144, %145 : vector<16x1xf32>
    %147 = vector.broadcast %146 : vector<16x1xf32> to vector<16x32xf32>
    %148 = arith.subf %142, %147 : vector<16x32xf32>
    %149 = arith.mulf %148, %148 : vector<16x32xf32>
    %cst_58 = arith.constant dense<0.000000e+00> : vector<16xf32>
    %150 = vector.multi_reduction <add>, %149, %cst_58 [1] : vector<16x32xf32> to vector<16xf32>
    %151 = vector.shape_cast %150 : vector<16xf32> to vector<16x1xf32>
    %cst_59 = arith.constant 3.200000e+01 : f32
    %152 = vector.broadcast %cst_59 : f32 to vector<16x1xf32>
    %153 = arith.divf %151, %152 : vector<16x1xf32>
    %154 = vector.broadcast %146 : vector<16x1xf32> to vector<16x32xf32>
    %155 = arith.subf %142, %154 : vector<16x32xf32>
    %cst_60 = arith.constant 9.99999974E-6 : f32
    %156 = vector.broadcast %cst_60 : f32 to vector<16x1xf32>
    %157 = arith.addf %153, %156 : vector<16x1xf32>
    %158 = math.rsqrt %157 : vector<16x1xf32>
    %159 = vector.broadcast %158 : vector<16x1xf32> to vector<16x32xf32>
    %160 = arith.mulf %155, %159 : vector<16x32xf32>
    %161 = vector.broadcast %22 : vector<1x32xf32> to vector<16x32xf32>
    %162 = arith.mulf %160, %161 : vector<16x32xf32>
    %163 = vector.broadcast %23 : vector<1x32xf32> to vector<16x32xf32>
    %164 = arith.addf %162, %163 : vector<16x32xf32>
    %c1 = arith.constant 1 : index
    %c0_61 = arith.constant 0 : index
    %c0_62 = arith.constant 0 : index
    %165 = vector.load %arg1[%c1, %c0_61, %c0_62] : memref<2x32x32xf32, #tpu.memory_space<vmem>>, vector<1x32x32xf32>
    %166 = vector.shape_cast %165 : vector<1x32x32xf32> to vector<32x32xf32>
    %c1_63 = arith.constant 1 : index
    %c0_64 = arith.constant 0 : index
    %c0_65 = arith.constant 0 : index
    %167 = vector.load %arg2[%c1_63, %c0_64, %c0_65] : memref<2x32x32xf32, #tpu.memory_space<vmem>>, vector<1x32x32xf32>
    %168 = vector.shape_cast %167 : vector<1x32x32xf32> to vector<32x32xf32>
    %c1_66 = arith.constant 1 : index
    %c0_67 = arith.constant 0 : index
    %c0_68 = arith.constant 0 : index
    %169 = vector.load %arg3[%c1_66, %c0_67, %c0_68] : memref<2x32x32xf32, #tpu.memory_space<vmem>>, vector<1x32x32xf32>
    %170 = vector.shape_cast %169 : vector<1x32x32xf32> to vector<32x32xf32>
    %c1_69 = arith.constant 1 : index
    %c0_70 = arith.constant 0 : index
    %c0_71 = arith.constant 0 : index
    %171 = vector.load %arg4[%c1_69, %c0_70, %c0_71] : memref<2x32x32xf32, #tpu.memory_space<vmem>>, vector<1x32x32xf32>
    %172 = vector.shape_cast %171 : vector<1x32x32xf32> to vector<32x32xf32>
    %c1_72 = arith.constant 1 : index
    %c0_73 = arith.constant 0 : index
    %c0_74 = arith.constant 0 : index
    %173 = vector.load %arg5[%c1_72, %c0_73, %c0_74] : memref<2x32x64xf32, #tpu.memory_space<vmem>>, vector<1x32x64xf32>
    %174 = vector.shape_cast %173 : vector<1x32x64xf32> to vector<32x64xf32>
    %c1_75 = arith.constant 1 : index
    %c0_76 = arith.constant 0 : index
    %c0_77 = arith.constant 0 : index
    %175 = vector.load %arg6[%c1_75, %c0_76, %c0_77] : memref<2x64x32xf32, #tpu.memory_space<vmem>>, vector<1x64x32xf32>
    %176 = vector.shape_cast %175 : vector<1x64x32xf32> to vector<64x32xf32>
    %c1_78 = arith.constant 1 : index
    %c0_79 = arith.constant 0 : index
    %c0_80 = arith.constant 0 : index
    %177 = vector.load %arg7[%c1_78, %c0_79, %c0_80] : memref<2x9x32xf32, #tpu.memory_space<vmem>>, vector<1x9x32xf32>
    %178 = vector.shape_cast %177 : vector<1x9x32xf32> to vector<9x32xf32>
    %179 = vector.extract_strided_slice %178 {offsets = [0, 0], sizes = [1, 32], strides = [1, 1]} : vector<9x32xf32> to vector<1x32xf32>
    %180 = vector.extract_strided_slice %178 {offsets = [1, 0], sizes = [1, 32], strides = [1, 1]} : vector<9x32xf32> to vector<1x32xf32>
    %181 = vector.extract_strided_slice %178 {offsets = [2, 0], sizes = [1, 32], strides = [1, 1]} : vector<9x32xf32> to vector<1x32xf32>
    %182 = vector.extract_strided_slice %178 {offsets = [3, 0], sizes = [1, 32], strides = [1, 1]} : vector<9x32xf32> to vector<1x32xf32>
    %183 = vector.extract_strided_slice %178 {offsets = [4, 0], sizes = [1, 32], strides = [1, 1]} : vector<9x32xf32> to vector<1x32xf32>
    %184 = vector.extract_strided_slice %178 {offsets = [5, 0], sizes = [1, 32], strides = [1, 1]} : vector<9x32xf32> to vector<1x32xf32>
    %185 = vector.extract_strided_slice %178 {offsets = [6, 0], sizes = [1, 32], strides = [1, 1]} : vector<9x32xf32> to vector<1x32xf32>
    %186 = vector.extract_strided_slice %178 {offsets = [7, 0], sizes = [1, 32], strides = [1, 1]} : vector<9x32xf32> to vector<1x32xf32>
    %187 = vector.extract_strided_slice %178 {offsets = [8, 0], sizes = [1, 32], strides = [1, 1]} : vector<9x32xf32> to vector<1x32xf32>
    %c1_81 = arith.constant 1 : index
    %c0_82 = arith.constant 0 : index
    %c0_83 = arith.constant 0 : index
    %188 = vector.load %arg8[%c1_81, %c0_82, %c0_83] : memref<2x1x64xf32, #tpu.memory_space<vmem>>, vector<1x1x64xf32>
    %189 = vector.shape_cast %188 : vector<1x1x64xf32> to vector<1x64xf32>
    %cst_84 = arith.constant dense<0.000000e+00> : vector<16x32xf32>
    %190 = tpu.matmul %164, %166, %cst_84 {dimension_numbers = #tpu.dot_dimension_numbers<[1], [0], [0], [1], [0, 0, 1, 1], [], []>} : vector<16x32xf32>, vector<32x32xf32>, vector<16x32xf32> -> vector<16x32xf32>
    %191 = vector.broadcast %179 : vector<1x32xf32> to vector<16x32xf32>
    %192 = arith.addf %190, %191 : vector<16x32xf32>
    %cst_85 = arith.constant dense<0.000000e+00> : vector<16x32xf32>
    %193 = tpu.matmul %164, %168, %cst_85 {dimension_numbers = #tpu.dot_dimension_numbers<[1], [0], [0], [1], [0, 0, 1, 1], [], []>} : vector<16x32xf32>, vector<32x32xf32>, vector<16x32xf32> -> vector<16x32xf32>
    %194 = vector.broadcast %180 : vector<1x32xf32> to vector<16x32xf32>
    %195 = arith.addf %193, %194 : vector<16x32xf32>
    %cst_86 = arith.constant dense<0.000000e+00> : vector<16x32xf32>
    %196 = tpu.matmul %164, %170, %cst_86 {dimension_numbers = #tpu.dot_dimension_numbers<[1], [0], [0], [1], [0, 0, 1, 1], [], []>} : vector<16x32xf32>, vector<32x32xf32>, vector<16x32xf32> -> vector<16x32xf32>
    %197 = vector.broadcast %181 : vector<1x32xf32> to vector<16x32xf32>
    %198 = arith.addf %196, %197 : vector<16x32xf32>
    %199 = vector.shape_cast %192 : vector<16x32xf32> to vector<2x8x32xf32>
    %200 = vector.shape_cast %195 : vector<16x32xf32> to vector<2x8x32xf32>
    %201 = vector.shape_cast %198 : vector<16x32xf32> to vector<2x8x32xf32>
    %202 = vector.extract_strided_slice %199 {offsets = [0, 0, 0], sizes = [2, 8, 8], strides = [1, 1, 1]} : vector<2x8x32xf32> to vector<2x8x8xf32>
    %203 = vector.extract_strided_slice %200 {offsets = [0, 0, 0], sizes = [2, 8, 8], strides = [1, 1, 1]} : vector<2x8x32xf32> to vector<2x8x8xf32>
    %204 = vector.extract_strided_slice %201 {offsets = [0, 0, 0], sizes = [2, 8, 8], strides = [1, 1, 1]} : vector<2x8x32xf32> to vector<2x8x8xf32>
    "tpu.trace_start"() <{level = 10 : i32, message = "ble,bse->bls"}> : () -> ()
    %cst_87 = arith.constant dense<0.000000e+00> : vector<2x8x8xf32>
    %205 = tpu.matmul %202, %203, %cst_87 {dimension_numbers = #tpu.dot_dimension_numbers<[2], [2], [1], [1], [0, 0, 0, 1, 1, 1], [0], [0]>} : vector<2x8x8xf32>, vector<2x8x8xf32>, vector<2x8x8xf32> -> vector<2x8x8xf32>
    "tpu.trace_stop"() : () -> ()
    %cst_88 = arith.constant 0.353553385 : f32
    %206 = vector.broadcast %cst_88 : f32 to vector<2x8x8xf32>
    %207 = arith.mulf %205, %206 : vector<2x8x8xf32>
    %cst_89 = arith.constant dense<0xFF800000> : vector<2x8xf32>
    %208 = vector.multi_reduction <maximumf>, %207, %cst_89 [2] : vector<2x8x8xf32> to vector<2x8xf32>
    %209 = vector.shape_cast %208 : vector<2x8xf32> to vector<2x8x1xf32>
    %210 = vector.broadcast %209 : vector<2x8x1xf32> to vector<2x8x8xf32>
    %211 = arith.subf %207, %210 : vector<2x8x8xf32>
    %212 = math.exp %211 : vector<2x8x8xf32>
    %cst_90 = arith.constant dense<0.000000e+00> : vector<2x8xf32>
    %213 = vector.multi_reduction <add>, %212, %cst_90 [2] : vector<2x8x8xf32> to vector<2x8xf32>
    %214 = vector.shape_cast %213 : vector<2x8xf32> to vector<2x8x1xf32>
    %215 = tpu.reciprocal %214 : vector<2x8x1xf32> -> vector<2x8x1xf32>
    %216 = vector.broadcast %215 : vector<2x8x1xf32> to vector<2x8x8xf32>
    %217 = arith.mulf %212, %216 : vector<2x8x8xf32>
    "tpu.trace_start"() <{level = 10 : i32, message = "bls,bse->ble"}> : () -> ()
    %cst_91 = arith.constant dense<0.000000e+00> : vector<2x8x8xf32>
    %218 = tpu.matmul %217, %204, %cst_91 {dimension_numbers = #tpu.dot_dimension_numbers<[2], [1], [1], [2], [0, 0, 0, 1, 1, 2], [0], [0]>} : vector<2x8x8xf32>, vector<2x8x8xf32>, vector<2x8x8xf32> -> vector<2x8x8xf32>
    "tpu.trace_stop"() : () -> ()
    %219 = vector.extract_strided_slice %199 {offsets = [0, 0, 8], sizes = [2, 8, 8], strides = [1, 1, 1]} : vector<2x8x32xf32> to vector<2x8x8xf32>
    %220 = vector.extract_strided_slice %200 {offsets = [0, 0, 8], sizes = [2, 8, 8], strides = [1, 1, 1]} : vector<2x8x32xf32> to vector<2x8x8xf32>
    %221 = vector.extract_strided_slice %201 {offsets = [0, 0, 8], sizes = [2, 8, 8], strides = [1, 1, 1]} : vector<2x8x32xf32> to vector<2x8x8xf32>
    "tpu.trace_start"() <{level = 10 : i32, message = "ble,bse->bls"}> : () -> ()
    %cst_92 = arith.constant dense<0.000000e+00> : vector<2x8x8xf32>
    %222 = tpu.matmul %219, %220, %cst_92 {dimension_numbers = #tpu.dot_dimension_numbers<[2], [2], [1], [1], [0, 0, 0, 1, 1, 1], [0], [0]>} : vector<2x8x8xf32>, vector<2x8x8xf32>, vector<2x8x8xf32> -> vector<2x8x8xf32>
    "tpu.trace_stop"() : () -> ()
    %cst_93 = arith.constant 0.353553385 : f32
    %223 = vector.broadcast %cst_93 : f32 to vector<2x8x8xf32>
    %224 = arith.mulf %222, %223 : vector<2x8x8xf32>
    %cst_94 = arith.constant dense<0xFF800000> : vector<2x8xf32>
    %225 = vector.multi_reduction <maximumf>, %224, %cst_94 [2] : vector<2x8x8xf32> to vector<2x8xf32>
    %226 = vector.shape_cast %225 : vector<2x8xf32> to vector<2x8x1xf32>
    %227 = vector.broadcast %226 : vector<2x8x1xf32> to vector<2x8x8xf32>
    %228 = arith.subf %224, %227 : vector<2x8x8xf32>
    %229 = math.exp %228 : vector<2x8x8xf32>
    %cst_95 = arith.constant dense<0.000000e+00> : vector<2x8xf32>
    %230 = vector.multi_reduction <add>, %229, %cst_95 [2] : vector<2x8x8xf32> to vector<2x8xf32>
    %231 = vector.shape_cast %230 : vector<2x8xf32> to vector<2x8x1xf32>
    %232 = tpu.reciprocal %231 : vector<2x8x1xf32> -> vector<2x8x1xf32>
    %233 = vector.broadcast %232 : vector<2x8x1xf32> to vector<2x8x8xf32>
    %234 = arith.mulf %229, %233 : vector<2x8x8xf32>
    "tpu.trace_start"() <{level = 10 : i32, message = "bls,bse->ble"}> : () -> ()
    %cst_96 = arith.constant dense<0.000000e+00> : vector<2x8x8xf32>
    %235 = tpu.matmul %234, %221, %cst_96 {dimension_numbers = #tpu.dot_dimension_numbers<[2], [1], [1], [2], [0, 0, 0, 1, 1, 2], [0], [0]>} : vector<2x8x8xf32>, vector<2x8x8xf32>, vector<2x8x8xf32> -> vector<2x8x8xf32>
    "tpu.trace_stop"() : () -> ()
    %236 = vector.extract_strided_slice %199 {offsets = [0, 0, 16], sizes = [2, 8, 8], strides = [1, 1, 1]} : vector<2x8x32xf32> to vector<2x8x8xf32>
    %237 = vector.extract_strided_slice %200 {offsets = [0, 0, 16], sizes = [2, 8, 8], strides = [1, 1, 1]} : vector<2x8x32xf32> to vector<2x8x8xf32>
    %238 = vector.extract_strided_slice %201 {offsets = [0, 0, 16], sizes = [2, 8, 8], strides = [1, 1, 1]} : vector<2x8x32xf32> to vector<2x8x8xf32>
    "tpu.trace_start"() <{level = 10 : i32, message = "ble,bse->bls"}> : () -> ()
    %cst_97 = arith.constant dense<0.000000e+00> : vector<2x8x8xf32>
    %239 = tpu.matmul %236, %237, %cst_97 {dimension_numbers = #tpu.dot_dimension_numbers<[2], [2], [1], [1], [0, 0, 0, 1, 1, 1], [0], [0]>} : vector<2x8x8xf32>, vector<2x8x8xf32>, vector<2x8x8xf32> -> vector<2x8x8xf32>
    "tpu.trace_stop"() : () -> ()
    %cst_98 = arith.constant 0.353553385 : f32
    %240 = vector.broadcast %cst_98 : f32 to vector<2x8x8xf32>
    %241 = arith.mulf %239, %240 : vector<2x8x8xf32>
    %cst_99 = arith.constant dense<0xFF800000> : vector<2x8xf32>
    %242 = vector.multi_reduction <maximumf>, %241, %cst_99 [2] : vector<2x8x8xf32> to vector<2x8xf32>
    %243 = vector.shape_cast %242 : vector<2x8xf32> to vector<2x8x1xf32>
    %244 = vector.broadcast %243 : vector<2x8x1xf32> to vector<2x8x8xf32>
    %245 = arith.subf %241, %244 : vector<2x8x8xf32>
    %246 = math.exp %245 : vector<2x8x8xf32>
    %cst_100 = arith.constant dense<0.000000e+00> : vector<2x8xf32>
    %247 = vector.multi_reduction <add>, %246, %cst_100 [2] : vector<2x8x8xf32> to vector<2x8xf32>
    %248 = vector.shape_cast %247 : vector<2x8xf32> to vector<2x8x1xf32>
    %249 = tpu.reciprocal %248 : vector<2x8x1xf32> -> vector<2x8x1xf32>
    %250 = vector.broadcast %249 : vector<2x8x1xf32> to vector<2x8x8xf32>
    %251 = arith.mulf %246, %250 : vector<2x8x8xf32>
    "tpu.trace_start"() <{level = 10 : i32, message = "bls,bse->ble"}> : () -> ()
    %cst_101 = arith.constant dense<0.000000e+00> : vector<2x8x8xf32>
    %252 = tpu.matmul %251, %238, %cst_101 {dimension_numbers = #tpu.dot_dimension_numbers<[2], [1], [1], [2], [0, 0, 0, 1, 1, 2], [0], [0]>} : vector<2x8x8xf32>, vector<2x8x8xf32>, vector<2x8x8xf32> -> vector<2x8x8xf32>
    "tpu.trace_stop"() : () -> ()
    %253 = vector.extract_strided_slice %199 {offsets = [0, 0, 24], sizes = [2, 8, 8], strides = [1, 1, 1]} : vector<2x8x32xf32> to vector<2x8x8xf32>
    %254 = vector.extract_strided_slice %200 {offsets = [0, 0, 24], sizes = [2, 8, 8], strides = [1, 1, 1]} : vector<2x8x32xf32> to vector<2x8x8xf32>
    %255 = vector.extract_strided_slice %201 {offsets = [0, 0, 24], sizes = [2, 8, 8], strides = [1, 1, 1]} : vector<2x8x32xf32> to vector<2x8x8xf32>
    "tpu.trace_start"() <{level = 10 : i32, message = "ble,bse->bls"}> : () -> ()
    %cst_102 = arith.constant dense<0.000000e+00> : vector<2x8x8xf32>
    %256 = tpu.matmul %253, %254, %cst_102 {dimension_numbers = #tpu.dot_dimension_numbers<[2], [2], [1], [1], [0, 0, 0, 1, 1, 1], [0], [0]>} : vector<2x8x8xf32>, vector<2x8x8xf32>, vector<2x8x8xf32> -> vector<2x8x8xf32>
    "tpu.trace_stop"() : () -> ()
    %cst_103 = arith.constant 0.353553385 : f32
    %257 = vector.broadcast %cst_103 : f32 to vector<2x8x8xf32>
    %258 = arith.mulf %256, %257 : vector<2x8x8xf32>
    %cst_104 = arith.constant dense<0xFF800000> : vector<2x8xf32>
    %259 = vector.multi_reduction <maximumf>, %258, %cst_104 [2] : vector<2x8x8xf32> to vector<2x8xf32>
    %260 = vector.shape_cast %259 : vector<2x8xf32> to vector<2x8x1xf32>
    %261 = vector.broadcast %260 : vector<2x8x1xf32> to vector<2x8x8xf32>
    %262 = arith.subf %258, %261 : vector<2x8x8xf32>
    %263 = math.exp %262 : vector<2x8x8xf32>
    %cst_105 = arith.constant dense<0.000000e+00> : vector<2x8xf32>
    %264 = vector.multi_reduction <add>, %263, %cst_105 [2] : vector<2x8x8xf32> to vector<2x8xf32>
    %265 = vector.shape_cast %264 : vector<2x8xf32> to vector<2x8x1xf32>
    %266 = tpu.reciprocal %265 : vector<2x8x1xf32> -> vector<2x8x1xf32>
    %267 = vector.broadcast %266 : vector<2x8x1xf32> to vector<2x8x8xf32>
    %268 = arith.mulf %263, %267 : vector<2x8x8xf32>
    "tpu.trace_start"() <{level = 10 : i32, message = "bls,bse->ble"}> : () -> ()
    %cst_106 = arith.constant dense<0.000000e+00> : vector<2x8x8xf32>
    %269 = tpu.matmul %268, %255, %cst_106 {dimension_numbers = #tpu.dot_dimension_numbers<[2], [1], [1], [2], [0, 0, 0, 1, 1, 2], [0], [0]>} : vector<2x8x8xf32>, vector<2x8x8xf32>, vector<2x8x8xf32> -> vector<2x8x8xf32>
    "tpu.trace_stop"() : () -> ()
    %270 = tpu.concatenate %218, %235, %252, %269 in 2 : vector<2x8x8xf32>, vector<2x8x8xf32>, vector<2x8x8xf32>, vector<2x8x8xf32> -> vector<2x8x32xf32>
    %271 = vector.shape_cast %270 : vector<2x8x32xf32> to vector<16x32xf32>
    %cst_107 = arith.constant dense<0.000000e+00> : vector<16x32xf32>
    %272 = tpu.matmul %271, %172, %cst_107 {dimension_numbers = #tpu.dot_dimension_numbers<[1], [0], [0], [1], [0, 0, 1, 1], [], []>} : vector<16x32xf32>, vector<32x32xf32>, vector<16x32xf32> -> vector<16x32xf32>
    %273 = vector.broadcast %182 : vector<1x32xf32> to vector<16x32xf32>
    %274 = arith.addf %272, %273 : vector<16x32xf32>
    %275 = arith.addf %164, %274 : vector<16x32xf32>
    %cst_108 = arith.constant dense<0.000000e+00> : vector<16xf32>
    %276 = vector.multi_reduction <add>, %275, %cst_108 [1] : vector<16x32xf32> to vector<16xf32>
    %277 = vector.shape_cast %276 : vector<16xf32> to vector<16x1xf32>
    %cst_109 = arith.constant 3.200000e+01 : f32
    %278 = vector.broadcast %cst_109 : f32 to vector<16x1xf32>
    %279 = arith.divf %277, %278 : vector<16x1xf32>
    %280 = vector.broadcast %279 : vector<16x1xf32> to vector<16x32xf32>
    %281 = arith.subf %275, %280 : vector<16x32xf32>
    %282 = arith.mulf %281, %281 : vector<16x32xf32>
    %cst_110 = arith.constant dense<0.000000e+00> : vector<16xf32>
    %283 = vector.multi_reduction <add>, %282, %cst_110 [1] : vector<16x32xf32> to vector<16xf32>
    %284 = vector.shape_cast %283 : vector<16xf32> to vector<16x1xf32>
    %cst_111 = arith.constant 3.200000e+01 : f32
    %285 = vector.broadcast %cst_111 : f32 to vector<16x1xf32>
    %286 = arith.divf %284, %285 : vector<16x1xf32>
    %287 = vector.broadcast %279 : vector<16x1xf32> to vector<16x32xf32>
    %288 = arith.subf %275, %287 : vector<16x32xf32>
    %cst_112 = arith.constant 9.99999974E-6 : f32
    %289 = vector.broadcast %cst_112 : f32 to vector<16x1xf32>
    %290 = arith.addf %286, %289 : vector<16x1xf32>
    %291 = math.rsqrt %290 : vector<16x1xf32>
    %292 = vector.broadcast %291 : vector<16x1xf32> to vector<16x32xf32>
    %293 = arith.mulf %288, %292 : vector<16x32xf32>
    %294 = vector.broadcast %184 : vector<1x32xf32> to vector<16x32xf32>
    %295 = arith.mulf %293, %294 : vector<16x32xf32>
    %296 = vector.broadcast %185 : vector<1x32xf32> to vector<16x32xf32>
    %297 = arith.addf %295, %296 : vector<16x32xf32>
    %cst_113 = arith.constant dense<0.000000e+00> : vector<16x64xf32>
    %298 = tpu.matmul %297, %174, %cst_113 {dimension_numbers = #tpu.dot_dimension_numbers<[1], [0], [0], [1], [0, 0, 1, 1], [], []>} : vector<16x32xf32>, vector<32x64xf32>, vector<16x64xf32> -> vector<16x64xf32>
    %299 = vector.broadcast %189 : vector<1x64xf32> to vector<16x64xf32>
    %300 = arith.addf %298, %299 : vector<16x64xf32>
    %cst_114 = arith.constant 0.000000e+00 : f32
    %301 = vector.broadcast %cst_114 : f32 to vector<16x64xf32>
    %302 = arith.maximumf %300, %301 : vector<16x64xf32>
    %cst_115 = arith.constant dense<0.000000e+00> : vector<16x32xf32>
    %303 = tpu.matmul %302, %176, %cst_115 {dimension_numbers = #tpu.dot_dimension_numbers<[1], [0], [0], [1], [0, 0, 1, 1], [], []>} : vector<16x64xf32>, vector<64x32xf32>, vector<16x32xf32> -> vector<16x32xf32>
    %304 = vector.broadcast %183 : vector<1x32xf32> to vector<16x32xf32>
    %305 = arith.addf %303, %304 : vector<16x32xf32>
    %306 = arith.addf %297, %305 : vector<16x32xf32>
    %cst_116 = arith.constant dense<0.000000e+00> : vector<16xf32>
    %307 = vector.multi_reduction <add>, %306, %cst_116 [1] : vector<16x32xf32> to vector<16xf32>
    %308 = vector.shape_cast %307 : vector<16xf32> to vector<16x1xf32>
    %cst_117 = arith.constant 3.200000e+01 : f32
    %309 = vector.broadcast %cst_117 : f32 to vector<16x1xf32>
    %310 = arith.divf %308, %309 : vector<16x1xf32>
    %311 = vector.broadcast %310 : vector<16x1xf32> to vector<16x32xf32>
    %312 = arith.subf %306, %311 : vector<16x32xf32>
    %313 = arith.mulf %312, %312 : vector<16x32xf32>
    %cst_118 = arith.constant dense<0.000000e+00> : vector<16xf32>
    %314 = vector.multi_reduction <add>, %313, %cst_118 [1] : vector<16x32xf32> to vector<16xf32>
    %315 = vector.shape_cast %314 : vector<16xf32> to vector<16x1xf32>
    %cst_119 = arith.constant 3.200000e+01 : f32
    %316 = vector.broadcast %cst_119 : f32 to vector<16x1xf32>
    %317 = arith.divf %315, %316 : vector<16x1xf32>
    %318 = vector.broadcast %310 : vector<16x1xf32> to vector<16x32xf32>
    %319 = arith.subf %306, %318 : vector<16x32xf32>
    %cst_120 = arith.constant 9.99999974E-6 : f32
    %320 = vector.broadcast %cst_120 : f32 to vector<16x1xf32>
    %321 = arith.addf %317, %320 : vector<16x1xf32>
    %322 = math.rsqrt %321 : vector<16x1xf32>
    %323 = vector.broadcast %322 : vector<16x1xf32> to vector<16x32xf32>
    %324 = arith.mulf %319, %323 : vector<16x32xf32>
    %325 = vector.broadcast %186 : vector<1x32xf32> to vector<16x32xf32>
    %326 = arith.mulf %324, %325 : vector<16x32xf32>
    %327 = vector.broadcast %187 : vector<1x32xf32> to vector<16x32xf32>
    %328 = arith.addf %326, %327 : vector<16x32xf32>
    %c0_121 = arith.constant 0 : index
    %c0_122 = arith.constant 0 : index
    %329 = vector.load %arg9[%c0_121, %c0_122] : memref<2x32xf32, #tpu.memory_space<vmem>>, vector<2x32xf32>
    %330 = vector.extract_strided_slice %329 {offsets = [0, 0], sizes = [1, 32], strides = [1, 1]} : vector<2x32xf32> to vector<1x32xf32>
    %331 = vector.extract_strided_slice %329 {offsets = [1, 0], sizes = [1, 32], strides = [1, 1]} : vector<2x32xf32> to vector<1x32xf32>
    %cst_123 = arith.constant dense<0.000000e+00> : vector<16xf32>
    %332 = vector.multi_reduction <add>, %328, %cst_123 [1] : vector<16x32xf32> to vector<16xf32>
    %333 = vector.shape_cast %332 : vector<16xf32> to vector<16x1xf32>
    %cst_124 = arith.constant 3.200000e+01 : f32
    %334 = vector.broadcast %cst_124 : f32 to vector<16x1xf32>
    %335 = arith.divf %333, %334 : vector<16x1xf32>
    %336 = vector.broadcast %335 : vector<16x1xf32> to vector<16x32xf32>
    %337 = arith.subf %328, %336 : vector<16x32xf32>
    %338 = arith.mulf %337, %337 : vector<16x32xf32>
    %cst_125 = arith.constant dense<0.000000e+00> : vector<16xf32>
    %339 = vector.multi_reduction <add>, %338, %cst_125 [1] : vector<16x32xf32> to vector<16xf32>
    %340 = vector.shape_cast %339 : vector<16xf32> to vector<16x1xf32>
    %cst_126 = arith.constant 3.200000e+01 : f32
    %341 = vector.broadcast %cst_126 : f32 to vector<16x1xf32>
    %342 = arith.divf %340, %341 : vector<16x1xf32>
    %343 = vector.broadcast %335 : vector<16x1xf32> to vector<16x32xf32>
    %344 = arith.subf %328, %343 : vector<16x32xf32>
    %cst_127 = arith.constant 9.99999974E-6 : f32
    %345 = vector.broadcast %cst_127 : f32 to vector<16x1xf32>
    %346 = arith.addf %342, %345 : vector<16x1xf32>
    %347 = math.rsqrt %346 : vector<16x1xf32>
    %348 = vector.broadcast %347 : vector<16x1xf32> to vector<16x32xf32>
    %349 = arith.mulf %344, %348 : vector<16x32xf32>
    %350 = vector.broadcast %330 : vector<1x32xf32> to vector<16x32xf32>
    %351 = arith.mulf %349, %350 : vector<16x32xf32>
    %352 = vector.broadcast %331 : vector<1x32xf32> to vector<16x32xf32>
    %353 = arith.addf %351, %352 : vector<16x32xf32>
    %c0_128 = arith.constant 0 : index
    %c0_129 = arith.constant 0 : index
    %354 = vector.load %arg10[%c0_128, %c0_129] : memref<16x32xf32, #tpu.memory_space<vmem>>, vector<16x32xf32>
    tpu.vector_store %arg10[%c0_128, %c0_129], %353 {strides = array<i32>} : memref<16x32xf32, #tpu.memory_space<vmem>>, vector<16x32xf32>,
    return
  }
}

</mosaic_0001>

<bundles_post_ra>
// kernel: tpu_custom_call.1
= control target key start
LH: loop header
LB: loop body
LE: loop exit
PB: predicated region body
PF: predicated region fallthrough
CT: control target
= control target key end

     0   :  { %15 = vsyncpa [#allocation3], 0  ;;  %s2966_s0 = inlined_call_operand.vmem [shape: f32[16,32], index: 0, kind: input, shape index: {}]   ;;  %s2967_s1 = inlined_call_operand.vmem [shape: f32[2,32,32], index: 1, kind: input, shape index: {}]   ;;  %s2968_s2 = inlined_call_operand.vmem [shape: f32[2,32,32], index: 2, kind: input, shape index: {}]   ;;  %s2969_s3 = inlined_call_operand.vmem [shape: f32[2,32,32], index: 3, kind: input, shape index: {}]   ;;  %s2970_s4 = inlined_call_operand.hbm [shape: f32[2,32,32], index: 4, kind: input, shape index: {}]   ;;  %s2971_s5 = inlined_call_operand.hbm [shape: f32[2,32,64], index: 5, kind: input, shape index: {}]   ;;  %s2972_s6 = inlined_call_operand.vmem [shape: f32[2,64,32], index: 6, kind: input, shape index: {}]   ;;  %s2973_s7 = inlined_call_operand.vmem [shape: f32[2,9,32], index: 7, kind: input, shape index: {}]   ;;  %s2974_s8 = inlined_call_operand.vmem [shape: f32[2,1,64], index: 8, kind: input, shape index: {}]   ;;  %s2975_s9 = inlined_call_operand.vmem [shape: f32[2,32], index: 9, kind: input, shape index: {}]   ;;  %s2976_s10 = inlined_call_operand.hbm [shape: f32[16,32], index: 10, kind: output, shape index: {}]  }
   0x1   :  { %16 = vsyncpa [#allocation6], 0 }
   0x2   :  { %17 = vsyncpa [#allocation4], 0  ;;  %s30_s15 = sshll.u32 %s2970_s4, 4  ;;  %s2365_s16 = smov [#allocation2]   ;;  %s31_s15 = int_to_ptr.hbm [resolvable:$true] %s30_s15 }
   0x3   :  { %s32_s17 = sshll.u32 %s2365_s16, 4  ;;  %s43_s20 = sshll.u32 %s2971_s5, 4  ;;  %s33_s17 = int_to_ptr.vmem [resolvable:$true] %s32_s17  ;;  %s44_s20 = int_to_ptr.hbm [resolvable:$true] %s43_s20 }
   0x4   :  { %s2366_s21 = smov 128   ;;  %s2367_s22 = smov 8  }
   0x5   :  { %38 = dma.hbm_to_vmem [thread:$0]  %s31_s15, 1024, %s33_s17, [#allocation3], %s2366_s21, %s2366_s21, %s2367_s22  }
   0x6   :  { %s2368_s23 = smov [#allocation5]  }
   0x7   :  { %s45_s24 = sshll.u32 %s2368_s23, 4  ;;  %s46_s24 = int_to_ptr.vmem [resolvable:$true] %s45_s24 }
   0x8   :  { %51 = dma.hbm_to_vmem [thread:$0]  %s44_s20, 1024, %s46_s24, [#allocation6], %s2366_s21, %s2366_s21, %s2367_s22  }
   0x9   :  { %2359 = dma.done.wait [#allocation3], 1024  }
   0xa   :  { %2360 = vsyncadd [#allocation3], 4294966272 }
   0xb   :  { %2361 = dma.done.wait [#allocation6], 1024  }
   0xc   :  { %2362 = vsyncadd [#allocation6], 4294966272  ;;  %v73_v0 = vld [vmem:[%s2967_s1 + $0x18] sm:$0xff]  ;;  %v72_v1 = vld [vmem:[%s2967_s1 + $0x10] sm:$0xff]  ;;  %vm102_vm0 = vcmask 261120   ;;  %vm180_vm1 = vcmask 64512  }
   0xd   :  { %121 = vmatpush.msra.mxu1 %v73_v0  ;;  %v71_v2 = vld [vmem:[%s2967_s1 + $0x8] sm:$0xff]  ;;  %v81_v3 = vld [vmem:[%s2969_s3 + $0x18] sm:$0xff]  ;;  %v80_v4 = vld [vmem:[%s2969_s3 + $0x10] sm:$0xff]  ;;  %s2370_s13 = smov 112   ;;  %s2371_s14 = smov 104  }
   0xe   :  { %v70_v5 = vld [vmem:[%s2967_s1] sm:$0xff]  ;;  %169 = vmatpush.msra.mxu2 %v81_v3  ;;  %v79_v7 = vld [vmem:[%s2969_s3 + $0x8] sm:$0xff]  ;;  %v77_v8 = vld [vmem:[%s2968_s2 + $0x18] sm:$0xff]  ;;  %s2372_s15 = smov 16   ;;  %s2373_s16 = smov 24  }
   0xf   :  { %122 = vmatpush.msra.mxu1 %v72_v1  ;;  %v2464_v6 = vld [vmem:[%s2966_s0] sm:$0xff]  ;;  %v76_v10 = vld [vmem:[%s2968_s2 + $0x10] sm:$0xff]  ;;  %v75_v11 = vld [vmem:[%s2968_s2 + $0x8] sm:$0xff]  ;;  %s2071_s28 = sshll.u32 %s2976_s10, 4  ;;  %s2072_s28 = int_to_ptr.hbm [resolvable:$true] %s2071_s28 }
  0x10   :  { %170 = vmatpush.msra.mxu2 %v80_v4  ;;  %v78_v9 = vld [vmem:[%s2969_s3] sm:$0xff]  ;;  %v2491_v13 = vld [vmem:[%s2966_s0 + $0x8] sm:$0xff]  ;;  %s2369_s0 = smov 120  }
  0x11   :  { %123 = vmatpush.msra.mxu1 %v71_v2  ;;  %v74_v12 = vld [vmem:[%s2968_s2] sm:$0xff] }
  0x12   :  { %171 = vmatpush.msra.mxu2 %v79_v7  ;;  %v2504_v16 = vld [vmem:[%s2973_s7] sm:$0xff] }
  0x13   :  { %124 = vmatpush.msra.mxu1 %v70_v5  ;;  %v132_v17 = vperm.slane %v2504_v16, 1  ;;  %v101_v18 = vperm.slane %v2504_v16, 0  ;;  %v156_v25 = vperm.slane %v2504_v16, 2 }
  0x14   :  { %2085 = vmatmul.msk.f32.vlgmr.msra.gmra.mxu1 %vm102_vm0, %v2464_v6  ;;  %172 = vmatpush.msra.mxu2 %v78_v9 }
  0x15   :  { %145 = vmatpush.msrb.mxu1 %v77_v8  ;;  %2089 = vmatmul.msk.f32.vlgmr.msra.gmra.mxu2 %vm102_vm0, %v2464_v6 }
  0x17   :  { %146 = vmatpush.msrb.mxu1 %v76_v10 }
  0x19   :  { %147 = vmatpush.msrb.mxu1 %v75_v11 }
  0x1b   :  { %148 = vmatpush.msrb.mxu1 %v74_v12 }
  0x1c   :  { %2086 = vmatmul.msk.f32.gmra.mxu1 %vm102_vm0, %v2491_v13 }
  0x1d   :  { %2090 = vmatmul.msk.f32.gmra.mxu2 %vm102_vm0, %v2491_v13 }
  0x24   :  { %2087 = vmatmul.msk.f32.vlgmr.msrb.gmra.mxu1 %vm102_vm0, %v2464_v6 }
  0x2c   :  { %2088 = vmatmul.msk.f32.gmra.mxu1 %vm102_vm0, %v2491_v13 }
  0x91   :  { %v126_v14 = vpop.f32.mrf.mxu1 }
  0x92   :  { %v127_v21 = vadd.f32 %v126_v14, %v101_v18 }
  0x98   :  { %v174_v26 = vpop.f32.mrf.mxu2 }
  0x99   :  { %v129_v15 = vpop.f32.mrf.mxu1  ;;  %v2523_v27 = vadd.f32 %v174_v26, %v156_v25 }
  0x9a   :  { %v130_v24 = vadd.f32 %v129_v15, %v101_v18 }
  0xa0   :  { %v177_v28 = vpop.f32.mrf.mxu2 }
  0xa1   :  { %v150_v19 = vpop.f32.mrf.mxu1  ;;  %v2526_v29 = vadd.f32 %v177_v28, %v156_v25 }
  0xa2   :  { %v151_v20 = vadd.f32 %v150_v19, %v132_v17 }
  0xa3   :  { %324 = vmatpush.msra.mxu0 %v2526_v29 }
  0xa4   :  { %331 = vrot.lane.b32.xlu1 %v151_v20, %s2369_s0  ;;  %2091 = vmatpush.xpose.msk.msra.mxu3 %vm180_vm1, %v151_v20 }
  0xa7   :  { %2092 = vmatmul.msk.f32.vlgmr.msra.gmra.mxu3 %vm180_vm1, %v127_v21 }
  0xa9   :  { %v153_v22 = vpop.f32.mrf.mxu1 }
  0xaa   :  { %v154_v23 = vadd.f32 %v153_v22, %v132_v17 }
  0xac   :  { %359 = vrot.lane.b32.xlu2 %v154_v23, %s2369_s0  ;;  %2093 = vmatpush.xpose.msk.msrb.mxu3 %vm180_vm1, %v154_v23 }
  0xad   :  { %329 = vrot.lane.b32.xlu1 %v127_v21, %s2369_s0 }
  0xaf   :  { %2094 = vmatmul.msk.f32.vlgmr.msrb.gmra.mxu3 %vm180_vm1, %v130_v24 }
  0xb0   :  { %301 = vmatpush.msra.mxu3 %v2523_v27 }
  0xb4   :  { %491 = vrot.lane.b32.xlu2 %v151_v20, %s2370_s13 }
  0xb5   :  { %489 = vrot.lane.b32.xlu1 %v127_v21, %s2370_s13 }
  0xbc   :  { %519 = vrot.lane.b32.xlu2 %v154_v23, %s2370_s13 }
  0xbd   :  { %649 = vrot.lane.b32.xlu1 %v151_v20, %s2371_s14 }
  0xc4   :  { %517 = vrot.lane.b32.xlu2 %v130_v24, %s2370_s13 }
  0xc5   :  { %647 = vrot.lane.b32.xlu1 %v127_v21, %s2371_s14 }
  0xcc   :  { %677 = vrot.lane.b32.xlu2 %v154_v23, %s2371_s14 }
 0x106   :  { %v360_v30 = vpop.permute.xlu2 %359 }
 0x107   :  { %2099 = vmatpush.xpose.msk.msrb.mxu2 %vm180_vm1, %v360_v30 }
 0x10e   :  { %v492_v31 = vpop.permute.xlu2 %491 }
 0x10f   :  { %2103 = vmatpush.xpose.msk.msra.mxu1 %vm180_vm1, %v492_v31 }
 0x116   :  { %v520_v32 = vpop.permute.xlu2 %519  ;;  %v332_v33 = vpop.permute.xlu1 %331 }
 0x117   :  { %2097 = vmatpush.xpose.msk.msrb.mxu0 %vm180_vm1, %v332_v33  ;;  %2105 = vmatpush.xpose.msk.msra.mxu2 %vm180_vm1, %v520_v32 }
 0x11e   :  { %v518_v0 = vpop.permute.xlu2 %517 }
 0x11f   :  { %v2533_v34 = vpop.permute.xlu1 %329 }
 0x126   :  { %v678_v17 = vpop.permute.xlu2 %677 }
 0x127   :  { %v490_v35 = vpop.permute.xlu1 %489 }
 0x128   :  { %2104 = vmatmul.msk.f32.vlgmr.msra.gmra.mxu1 %vm180_vm1, %v490_v35 }
 0x12a   :  { %v204_v36 = vpop.f32.mrf.mxu3 }
 0x12b   :  { %v233_v37 = vmul.f32 0.35355338, %v204_v36 }
 0x12d   :  { %v235_v38 = vsel %vm180_vm1, %v233_v37, -inf }
 0x12e   :  { %236 = vmax.xlane.f32.xlu1 %v235_v38 }
 0x12f   :  { %v650_v39 = vpop.permute.xlu1 %649 }
 0x130   :  { %2109 = vmatpush.xpose.msk.msrb.mxu1 %vm180_vm1, %v650_v39 }
 0x132   :  { %v230_v40 = vpop.f32.mrf.mxu3 }
 0x133   :  { %v234_v41 = vmul.f32 0.35355338, %v230_v40 }
 0x135   :  { %v238_v42 = vsel %vm180_vm1, %v234_v41, -inf }
 0x136   :  { %239 = vmax.xlane.f32.xlu0 %v238_v42 }
 0x137   :  { %v648_v43 = vpop.permute.xlu1 %647 }
 0x138   :  { %2110 = vmatmul.msk.f32.vlgmr.msrb.gmra.mxu1 %vm180_vm1, %v648_v43 }
 0x1a1   :  { %v237_v46 = vpop.xlane.xlu1 %236 }
 0x1a2   :  { %v241_v49 = vsub.f32 %v233_v37, %v237_v46 }
 0x1a4   :  { %v243_v50 = vmul.f32 1.442695, %v241_v49 }
 0x1a5   :  { %v514_v48 = vpop.f32.mrf.mxu1 }
 0x1a6   :  { %v2548_v58 = vmul.f32 0.35355338, %v514_v48 }
 0x1a8   :  { %v547_v59 = vsel %vm180_vm1, %v2548_v58, -inf }
 0x1a9   :  { %v240_v44 = vpop.xlane.xlu0 %239 }
 0x1aa   :  { %v242_v45 = vsub.f32 %v234_v41, %v240_v44 }
 0x1ac   :  { %v245_v47 = vmul.f32 1.442695, %v242_v45 }
 0x1ae   :  { %2200 = vpow2.f32 %v245_v47 }
 0x1af   :  { %2202 = vpow2.f32 %v243_v50 }
 0x1b4   :  { %v2201_v51 = vpop.eup %2200 }
 0x1b5   :  { %v672_v52 = vpop.f32.mrf.mxu1  ;;  %v250_v53 = vsel %vm180_vm1, %v2201_v51, 0.0  ;;  %v2203_v56 = vpop.eup %2202 }
 0x1b6   :  { %v2541_v54 = vmul.f32 0.35355338, %v672_v52  ;;  %251 = vadd.xlane.f32.xlu0 %v250_v53  ;;  %v247_v57 = vsel %vm180_vm1, %v2203_v56, 0.0 }
 0x1b8   :  { %v705_v55 = vsel %vm180_vm1, %v2541_v54, -inf }
 0x1b9   :  { %706 = vmax.xlane.f32.xlu1 %v705_v55 }
 0x1c1   :  { %248 = vadd.xlane.f32.xlu1 %v247_v57 }
 0x1ca   :  { %357 = vrot.lane.b32.xlu0 %v130_v24, %s2369_s0 }
 0x1d2   :  { %675 = vrot.lane.b32.xlu0 %v130_v24, %s2371_s14 }
 0x1fc   :  { %548 = vmax.xlane.f32.xlu0 %v547_v59 }
 0x229   :  { %v252_v60 = vpop.xlane.xlu0 %251 }
 0x22a   :  { %2204 = vrcp.f32 %v252_v60  ;;  %v278_v2 = vand.u32 2147483648, %v252_v60  ;;  %v276_v5 = vand.u32 2147483647, %v252_v60  ;;  %vm272_vm3 = vweird.f32 %v252_v60 }
 0x22c   :  { %v707_v61 = vpop.xlane.xlu1 %706  ;;  %v279_v8 = vor.u32 1.1754944e-38, %v278_v2  ;;  %vm277_vm5 = vcmp.eq.f32.partialorder %v276_v5, 8.507059e+37 }
 0x22d   :  { %v711_v32 = vsub.f32 %v2541_v54, %v707_v61 }
 0x22f   :  { %v713_v37 = vmul.f32 1.442695, %v711_v32 }
 0x230   :  { %v2205_v62 = vpop.eup %2204 }
 0x231   :  { %v268_v63 = vmul.f32 %v2205_v62, %v252_v60  ;;  %vm273_vm2 = vweird.f32 %v2205_v62 }
 0x232   :  { %vm274_vm4 = vmor %vm272_vm3, %vm273_vm2 }
 0x233   :  { %v269_v1 = vsub.f32 1.0, %v268_v63 }
 0x234   :  { %v249_v3 = vpop.xlane.xlu1 %248 }
 0x235   :  { %v270_v4 = vmul.f32 %v2205_v62, %v269_v1  ;;  %2206 = vrcp.f32 %v249_v3  ;;  %v264_v19 = vand.u32 2147483648, %v249_v3  ;;  %v262_v21 = vand.u32 2147483647, %v249_v3 }
 0x236   :  { %vm258_vm7 = vweird.f32 %v249_v3  ;;  %2208 = vpow2.f32 %v713_v37 }
 0x237   :  { %v271_v7 = vadd.f32 %v2205_v62, %v270_v4  ;;  %v265_v23 = vor.u32 1.1754944e-38, %v264_v19  ;;  %vm263_vm9 = vcmp.eq.f32.partialorder %v262_v21, 8.507059e+37 }
 0x239   :  { %v275_v9 = vsel %vm274_vm4, %v2205_v62, %v271_v7 }
 0x23a   :  { %v280_v10 = vsel %vm277_vm5, %v279_v8, %v275_v9 }
 0x23b   :  { %v2207_v11 = vpop.eup %2206  ;;  %v282_v12 = vmul.f32 %v2201_v51, %v280_v10 }
 0x23c   :  { %v254_v14 = vmul.f32 %v2207_v11, %v249_v3  ;;  %v358_v15 = vpop.permute.xlu0 %357  ;;  %vm259_vm6 = vweird.f32 %v2207_v11  ;;  %v2567_v44 = vpop.eup %2208 }
 0x23d   :  { %2096 = vmatmul.msk.f32.vlgmr.msra.gmra.mxu0 %vm180_vm1, %v282_v12  ;;  %2100 = vmatmul.msk.f32.vlgmr.msrb.gmra.mxu2 %vm180_vm1, %v358_v15  ;;  %vm260_vm8 = vmor %vm258_vm7, %vm259_vm6  ;;  %v717_v48 = vsel %vm180_vm1, %v2567_v44, 0.0 }
 0x23e   :  { %v255_v18 = vsub.f32 1.0, %v254_v14  ;;  %2111 = vmatpush.xpose.msk.msrb.mxu2 %vm180_vm1, %v678_v17 }
 0x240   :  { %v256_v20 = vmul.f32 %v2207_v11, %v255_v18 }
 0x242   :  { %v257_v22 = vadd.f32 %v2207_v11, %v256_v20 }
 0x244   :  { %v261_v24 = vsel %vm260_vm8, %v2207_v11, %v257_v22  ;;  %v676_v28 = vpop.permute.xlu0 %675 }
 0x245   :  { %v266_v25 = vsel %vm263_vm9, %v265_v23, %v261_v24  ;;  %2098 = vmatmul.msk.f32.vlgmr.msrb.gmra.mxu0 %vm180_vm1, %v2533_v34  ;;  %2106 = vmatmul.msk.f32.vlgmr.msra.gmra.mxu2 %vm180_vm1, %v518_v0 }
 0x246   :  { %v281_v26 = vmul.f32 %v2203_v56, %v266_v25 }
 0x248   :  { %2095 = vmatmul.msk.f32.vlgmr.msra.gmra.mxu3 %vm180_vm1, %v281_v26 }
 0x24d   :  { %2112 = vmatmul.msk.f32.vlgmr.msrb.gmra.mxu2 %vm180_vm1, %v676_v28 }
 0x26f   :  { %v549_v38 = vpop.xlane.xlu0 %548 }
 0x270   :  { %v553_v42 = vsub.f32 %v2548_v58, %v549_v38 }
 0x272   :  { %v555_v45 = vmul.f32 1.442695, %v553_v42 }
 0x274   :  { %2210 = vpow2.f32 %v555_v45 }
 0x27a   :  { %v2572_v50 = vpop.eup %2210 }
 0x27b   :  { %v559_v51 = vsel %vm180_vm1, %v2572_v50, 0.0 }
 0x2ba   :  { %v2560_v30 = vpop.f32.mrf.mxu0 }
 0x2c0   :  { %v382_v31 = vpop.f32.mrf.mxu2 }
 0x2c1   :  { %v386_v39 = vmul.f32 0.35355338, %v382_v31 }
 0x2c2   :  { %v354_v33 = vpop.f32.mrf.mxu0 }
 0x2c3   :  { %v385_v35 = vmul.f32 0.35355338, %v354_v33  ;;  %v390_v43 = vsel %vm180_vm1, %v386_v39, -inf }
 0x2c5   :  { %v387_v36 = vsel %vm180_vm1, %v385_v35, -inf }
 0x2c6   :  { %388 = vmax.xlane.f32.xlu2 %v387_v36 }
 0x2c8   :  { %v542_v34 = vpop.f32.mrf.mxu2 }
 0x2c9   :  { %v546_v40 = vmul.f32 0.35355338, %v542_v34 }
 0x2cb   :  { %v550_v41 = vsel %vm180_vm1, %v546_v40, -inf }
 0x2cc   :  { %551 = vmax.xlane.f32.xlu0 %v550_v41 }
 0x2ce   :  { %391 = vmax.xlane.f32.xlu2 %v390_v43 }
 0x2d0   :  { %v700_v46 = vpop.f32.mrf.mxu2 }
 0x2d1   :  { %v704_v47 = vmul.f32 0.35355338, %v700_v46 }
 0x2d3   :  { %v708_v49 = vsel %vm180_vm1, %v704_v47, -inf }
 0x2d4   :  { %718 = vadd.xlane.f32.xlu0 %v717_v48 }
 0x2d6   :  { %709 = vmax.xlane.f32.xlu2 %v708_v49 }
 0x2de   :  { %560 = vadd.xlane.f32.xlu2 %v559_v51 }
 0x2e8   :  { %595 = vrot.lane.b32.xlu0 %v2523_v27, %s2370_s13 }
 0x2f6   :  { %436 = vrot.lane.b32.xlu2 %v2523_v27, %s2369_s0 }
 0x2fe   :  { %753 = vrot.lane.b32.xlu2 %v2523_v27, %s2371_s14 }
 0x306   :  { %779 = vrot.lane.b32.xlu2 %v2526_v29, %s2371_s14 }
 0x339   :  { %v389_v52 = vpop.xlane.xlu2 %388 }
 0x33a   :  { %v393_v53 = vsub.f32 %v385_v35, %v389_v52 }
 0x33c   :  { %v395_v54 = vmul.f32 1.442695, %v393_v53 }
 0x33e   :  { %2212 = vpow2.f32 %v395_v54 }
 0x33f   :  { %v552_v55 = vpop.xlane.xlu0 %551 }
 0x340   :  { %v554_v59 = vsub.f32 %v546_v40, %v552_v55 }
 0x341   :  { %v392_v56 = vpop.xlane.xlu2 %391 }
 0x342   :  { %v394_v57 = vsub.f32 %v386_v39, %v392_v56  ;;  %v557_v62 = vmul.f32 1.442695, %v554_v59 }
 0x344   :  { %v2213_v58 = vpop.eup %2212  ;;  %v397_v60 = vmul.f32 1.442695, %v394_v57 }
 0x345   :  { %v399_v61 = vsel %vm180_vm1, %v2213_v58, 0.0 }
 0x346   :  { %2214 = vpow2.f32 %v397_v60  ;;  %400 = vadd.xlane.f32.xlu0 %v399_v61 }
 0x347   :  { %2216 = vpow2.f32 %v557_v62  ;;  %v2591_v5 = vpop.xlane.xlu0 %718 }
 0x348   :  { %v734_v48 = vand.u32 2147483648, %v2591_v5  ;;  %vm728_vm5 = vweird.f32 %v2591_v5  ;;  %v732_v49 = vand.u32 2147483647, %v2591_v5 }
 0x349   :  { %v710_v63 = vpop.xlane.xlu2 %709 }
 0x34a   :  { %v712_v0 = vsub.f32 %v704_v47, %v710_v63  ;;  %v735_v54 = vor.u32 1.1754944e-38, %v734_v48  ;;  %vm733_vm7 = vcmp.eq.f32.partialorder %v732_v49, 8.507059e+37 }
 0x34c   :  { %v2585_v27 = vpop.eup %2214  ;;  %v715_v2 = vmul.f32 1.442695, %v712_v0 }
 0x34d   :  { %v402_v1 = vsel %vm180_vm1, %v2585_v27, 0.0  ;;  %v2589_v4 = vpop.eup %2216 }
 0x34e   :  { %403 = vadd.xlane.f32.xlu1 %v402_v1  ;;  %2218 = vpow2.f32 %v715_v2  ;;  %v562_v7 = vsel %vm180_vm1, %v2589_v4, 0.0 }
 0x351   :  { %v561_v3 = vpop.xlane.xlu2 %560 }
 0x352   :  { %2220 = vrcp.f32 %v561_v3  ;;  %v576_v36 = vand.u32 2147483648, %v561_v3  ;;  %vm570_vm15 = vweird.f32 %v561_v3  ;;  %v574_v34 = vand.u32 2147483647, %v561_v3 }
 0x354   :  { %v2595_v9 = vpop.eup %2218  ;;  %v577_v43 = vor.u32 1.1754944e-38, %v576_v36  ;;  %vm575_vm3 = vcmp.eq.f32.partialorder %v574_v34, 8.507059e+37  ;;  %v85_v34 = vld [vmem:[#allocation2 + $0x18] sm:$0xff] }
 0x355   :  { %v720_v11 = vsel %vm180_vm1, %v2595_v9, 0.0  ;;  %856 = vmatpush.msra.mxu1 %v85_v34 }
 0x356   :  { %563 = vadd.xlane.f32.xlu1 %v562_v7 }
 0x358   :  { %v2221_v14 = vpop.eup %2220 }
 0x359   :  { %v437_v8 = vpop.permute.xlu2 %436  ;;  %v566_v15 = vmul.f32 %v2221_v14, %v561_v3  ;;  %vm571_vm13 = vweird.f32 %v2221_v14 }
 0x35a   :  { %621 = vrot.lane.b32.xlu0 %v2526_v29, %s2370_s13  ;;  %457 = vmatpush.msrb.mxu3 %v437_v8  ;;  %v596_v10 = vpop.permute.xlu0 %595  ;;  %vm572_vm2 = vmor %vm570_vm15, %vm571_vm13 }
 0x35b   :  { %v567_v19 = vsub.f32 1.0, %v566_v15 }
 0x35c   :  { %616 = vmatpush.msra.mxu3 %v596_v10 }
 0x35d   :  { %v568_v25 = vmul.f32 %v2221_v14, %v567_v19 }
 0x35e   :  { %721 = vadd.xlane.f32.xlu1 %v720_v11 }
 0x35f   :  { %v569_v33 = vadd.f32 %v2221_v14, %v568_v25 }
 0x361   :  { %v573_v40 = vsel %vm572_vm2, %v2221_v14, %v569_v33  ;;  %v754_v41 = vpop.permute.xlu2 %753 }
 0x362   :  { %v578_v46 = vsel %vm575_vm3, %v577_v43, %v573_v40  ;;  %v82_v40 = vld [vmem:[#allocation2] sm:$0xff] }
 0x363   :  { %v593_v52 = vmul.f32 %v2572_v50, %v578_v46 }
 0x377   :  { %463 = vrot.lane.b32.xlu1 %v2526_v29, %s2369_s0 }
 0x3b9   :  { %v401_v12 = vpop.xlane.xlu0 %400 }
 0x3ba   :  { %2222 = vrcp.f32 %v401_v12  ;;  %v416_v24 = vand.u32 2147483648, %v401_v12  ;;  %v414_v29 = vand.u32 2147483647, %v401_v12  ;;  %vm410_vm11 = vweird.f32 %v401_v12 }
 0x3bb   :  { %2224 = vrcp.f32 %v2591_v5 }
 0x3bc   :  { %v417_v32 = vor.u32 1.1754944e-38, %v416_v24  ;;  %vm415_vm14 = vcmp.eq.f32.partialorder %v414_v29, 8.507059e+37 }
 0x3c0   :  { %v2223_v17 = vpop.eup %2222 }
 0x3c1   :  { %v2225_v18 = vpop.eup %2224  ;;  %v406_v20 = vmul.f32 %v2223_v17, %v401_v12  ;;  %v2604_v22 = vpop.xlane.xlu1 %403  ;;  %vm411_vm10 = vweird.f32 %v2223_v17 }
 0x3c2   :  { %v724_v23 = vmul.f32 %v2225_v18, %v2591_v5  ;;  %vm412_vm12 = vmor %vm410_vm11, %vm411_vm10  ;;  %2226 = vrcp.f32 %v2604_v22  ;;  %vm729_vm4 = vweird.f32 %v2225_v18  ;;  %v430_v0 = vand.u32 2147483648, %v2604_v22 }
 0x3c3   :  { %v407_v21 = vsub.f32 1.0, %v406_v20  ;;  %vm730_vm6 = vmor %vm728_vm5, %vm729_vm4  ;;  %vm424_vm9 = vweird.f32 %v2604_v22  ;;  %v428_v1 = vand.u32 2147483647, %v2604_v22  ;;  %v780_v20 = vpop.permute.xlu2 %779 }
 0x3c4   :  { %v725_v31 = vsub.f32 1.0, %v724_v23  ;;  %v431_v7 = vor.u32 1.1754944e-38, %v430_v0 }
 0x3c5   :  { %v408_v26 = vmul.f32 %v2223_v17, %v407_v21  ;;  %vm429_vm11 = vcmp.eq.f32.partialorder %v428_v1, 8.507059e+37 }
 0x3c6   :  { %v726_v39 = vmul.f32 %v2225_v18, %v725_v31 }
 0x3c7   :  { %v409_v28 = vadd.f32 %v2223_v17, %v408_v26 }
 0x3c8   :  { %v2227_v45 = vpop.eup %2226  ;;  %v727_v47 = vadd.f32 %v2225_v18, %v726_v39  ;;  %v83_v39 = vld [vmem:[#allocation2 + $0x8] sm:$0xff] }
 0x3c9   :  { %v413_v35 = vsel %vm412_vm12, %v2223_v17, %v409_v28  ;;  %v564_v42 = vpop.xlane.xlu1 %563  ;;  %v420_v51 = vmul.f32 %v2227_v45, %v2604_v22  ;;  %vm425_vm8 = vweird.f32 %v2227_v45 }
 0x3ca   :  { %v418_v37 = vsel %vm415_vm14, %v417_v32, %v413_v35  ;;  %2228 = vrcp.f32 %v564_v42  ;;  %v731_v53 = vsel %vm730_vm6, %v2225_v18, %v727_v47  ;;  %vm426_vm10 = vmor %vm424_vm9, %vm425_vm8  ;;  %v590_v11 = vand.u32 2147483648, %v564_v42  ;;  %v303_v32 = vpop.f32.mrf.mxu3 }
 0x3cb   :  { %v433_v38 = vmul.f32 %v2213_v58, %v418_v37  ;;  %v421_v55 = vsub.f32 1.0, %v420_v51  ;;  %v736_v58 = vsel %vm733_vm7, %v735_v54, %v731_v53  ;;  %vm584_vm13 = vweird.f32 %v564_v42 }
 0x3cc   :  { %v751_v61 = vmul.f32 %v2567_v44, %v736_v58  ;;  %v588_v12 = vand.u32 2147483647, %v564_v42  ;;  %v622_v18 = vpop.permute.xlu0 %621  ;;  %v591_v21 = vor.u32 1.1754944e-38, %v590_v11  ;;  %vm831_vm6 = vcmask 130048  }
 0x3cd   :  { %2101 = vmatmul.msk.f32.vlgmr.msrb.gmra.mxu3 %vm180_vm1, %v433_v38  ;;  %v422_v59 = vmul.f32 %v2227_v45, %v421_v55  ;;  %v84_v38 = vld [vmem:[#allocation2 + $0x10] sm:$0xff]  ;;  %vm834_vm7 = vcmask 195584   ;;  %v837_v55 = vperm.slane %v2504_v16, 3 }
 0x3ce   :  { %774 = vmatpush.msrb.mxu3 %v754_v41  ;;  %vm589_vm15 = vcmp.eq.f32.partialorder %v588_v12, 8.507059e+37  ;;  %857 = vmatpush.msra.mxu1 %v84_v38 }
 0x3cf   :  { %v423_v62 = vadd.f32 %v2227_v45, %v422_v59 }
 0x3d0   :  { %v2229_v57 = vpop.eup %2228  ;;  %858 = vmatpush.msra.mxu1 %v83_v39  ;;  %v94_v39 = vld [vmem:[%s2972_s6 + $0x20] sm:$0xff] }
 0x3d1   :  { %v722_v56 = vpop.xlane.xlu1 %721  ;;  %v580_v60 = vmul.f32 %v2229_v57, %v564_v42  ;;  %v427_v2 = vsel %vm426_vm10, %v2227_v45, %v423_v62  ;;  %vm585_vm12 = vweird.f32 %v2229_v57 }
 0x3d2   :  { %2230 = vrcp.f32 %v722_v56  ;;  %v432_v8 = vsel %vm429_vm11, %v431_v7, %v427_v2  ;;  %vm586_vm14 = vmor %vm584_vm13, %vm585_vm12  ;;  %v748_v24 = vand.u32 2147483648, %v722_v56  ;;  %vm742_vm3 = vweird.f32 %v722_v56  ;;  %859 = vmatpush.msra.mxu1 %v82_v40 }
 0x3d3   :  { %v581_v50 = vsub.f32 1.0, %v580_v60  ;;  %v434_v15 = vmul.f32 %v2585_v27, %v432_v8  ;;  %v746_v25 = vand.u32 2147483647, %v722_v56 }
 0x3d4   :  { %v749_v29 = vor.u32 1.1754944e-38, %v748_v24 }
 0x3d5   :  { %2107 = vmatmul.msk.f32.vlgmr.msra.gmra.mxu3 %vm180_vm1, %v593_v52  ;;  %v582_v3 = vmul.f32 %v2229_v57, %v581_v50  ;;  %vm747_vm5 = vcmp.eq.f32.partialorder %v746_v25, 8.507059e+37  ;;  %v2374_v50 = vmov 32.0  }
 0x3d6   :  { %2232 = vrcp.f32 %v2374_v50 }
 0x3d7   :  { %v583_v44 = vadd.f32 %v2229_v57, %v582_v3 }
 0x3d8   :  { %v2231_v63 = vpop.eup %2230 }
 0x3d9   :  { %v738_v5 = vmul.f32 %v2231_v63, %v722_v56  ;;  %v587_v17 = vsel %vm586_vm14, %v2229_v57, %v583_v44  ;;  %vm743_vm2 = vweird.f32 %v2231_v63 }
 0x3da   :  { %v592_v22 = vsel %vm589_vm15, %v591_v21, %v587_v17  ;;  %vm744_vm4 = vmor %vm742_vm3, %vm743_vm2  ;;  %v89_v17 = vld [vmem:[#allocation5 + $0x18] sm:$0xff]  ;;  %vm961_vm15 = vcmask 523264  }
 0x3db   :  { %v739_v10 = vsub.f32 1.0, %v738_v5  ;;  %v594_v27 = vmul.f32 %v2589_v4, %v592_v22  ;;  %947 = vmatpush.msra.mxu2 %v89_v17 }
 0x3dd   :  { %2113 = vmatmul.msk.f32.vlgmr.msrb.gmra.mxu3 %vm180_vm1, %v751_v61  ;;  %v740_v19 = vmul.f32 %v2231_v63, %v739_v10 }
 0x3df   :  { %v741_v23 = vadd.f32 %v2231_v63, %v740_v19  ;;  %v87_v19 = vld [vmem:[#allocation5 + $0x8] sm:$0xff] }
 0x3e1   :  { %v745_v26 = vsel %vm744_vm4, %v2231_v63, %v741_v23  ;;  %v2233_v63 = vpop.eup %2232 }
 0x3e2   :  { %v750_v28 = vsel %vm747_vm5, %v749_v29, %v745_v26  ;;  %v876_v0 = vmul.f32 32.0, %v2233_v63  ;;  %vm880_vm8 = vweird.f32 %v2233_v63 }
 0x3e3   :  { %v752_v31 = vmul.f32 %v2595_v9, %v750_v28 }
 0x3e4   :  { %v877_v1 = vsub.f32 1.0, %v876_v0 }
 0x3e6   :  { %v878_v2 = vmul.f32 %v2233_v63, %v877_v1 }
 0x3e8   :  { %v879_v3 = vadd.f32 %v2233_v63, %v878_v2 }
 0x3e9   :  { %v464_v14 = vpop.permute.xlu1 %463 }
 0x3ea   :  { %484 = vmatpush.msra.mxu0 %v464_v14  ;;  %v2646_v5 = vsel %vm880_vm8, %v2233_v63, %v879_v3  ;;  %v960_v63 = vperm.slane %v2504_v16, 4 }
 0x3eb   :  { %2102 = vmatmul.msk.f32.vlgmr.msra.gmra.mxu0 %vm180_vm1, %v434_v15 }
 0x3ec   :  { %642 = vmatpush.msrb.mxu0 %v622_v18  ;;  %v88_v18 = vld [vmem:[#allocation5 + $0x10] sm:$0xff] }
 0x3ed   :  { %948 = vmatpush.msra.mxu2 %v88_v18 }
 0x3ee   :  { %800 = vmatpush.msra.mxu0 %v780_v20  ;;  %v86_v20 = vld [vmem:[#allocation5] sm:$0xff] }
 0x3ef   :  { %949 = vmatpush.msra.mxu2 %v87_v19 }
 0x3f1   :  { %950 = vmatpush.msra.mxu2 %v86_v20  ;;  %v2124_v20 = vld [vmem:[%s2967_s1 + $0x38] sm:$0xff] }
 0x3f3   :  { %2108 = vmatmul.msk.f32.vlgmr.msrb.gmra.mxu0 %vm180_vm1, %v594_v27 }
 0x3f4   :  { %1101 = vmatpush.msrb.mxu0 %v2124_v20 }
 0x3fb   :  { %2114 = vmatmul.msk.f32.vlgmr.msra.gmra.mxu0 %vm180_vm1, %v752_v31  ;;  %v920_v31 = vperm.slane %v2504_v16, 5 }
 0x450   :  { %v459_v33 = vpop.f32.mrf.mxu3 }
 0x451   :  { %807 = vrot.lane.b32.xlu0 %v459_v33, %s2367_s22  ;;  %v96_v33 = vld [vmem:[%s2972_s6 + $0x30] sm:$0xff] }
 0x458   :  { %v618_v35 = vpop.f32.mrf.mxu3 }
 0x459   :  { %815 = vrot.lane.b32.xlu2 %v618_v35, %s2372_s15 }
 0x460   :  { %v776_v4 = vpop.f32.mrf.mxu3 }
 0x461   :  { %823 = vrot.lane.b32.xlu0 %v776_v4, %s2373_s16 }
 0x468   :  { %v486_v36 = vpop.f32.mrf.mxu0 }
 0x469   :  { %809 = vrot.lane.b32.xlu1 %v486_v36, %s2367_s22  ;;  %v923_v36 = vperm.slane %v2504_v16, 6 }
 0x470   :  { %v644_v37 = vpop.f32.mrf.mxu0 }
 0x471   :  { %817 = vrot.lane.b32.xlu2 %v644_v37, %s2372_s15  ;;  %v95_v37 = vld [vmem:[%s2972_s6 + $0x28] sm:$0xff] }
 0x478   :  { %v802_v9 = vpop.f32.mrf.mxu0 }
 0x479   :  { %825 = vrot.lane.b32.xlu0 %v802_v9, %s2373_s16 }
 0x4b3   :  { %v816_v43 = vpop.permute.xlu2 %815 }
 0x4c3   :  { %v808_v41 = vpop.permute.xlu0 %807 }
 0x4c4   :  { %v829_v42 = vsel %vm180_vm1, %v303_v32, %v808_v41  ;;  %v97_v32 = vld [vmem:[%s2972_s6 + $0x38] sm:$0xff] }
 0x4c5   :  { %v832_v45 = vsel %vm831_vm6, %v829_v42, %v816_v43  ;;  %976 = vmatpush.msra.mxu3 %v97_v32  ;;  %v93_v42 = vld [vmem:[%s2972_s6 + $0x18] sm:$0xff]  ;;  %v2129_v32 = vld [vmem:[%s2969_s3 + $0x20] sm:$0xff] }
 0x4c7   :  { %977 = vmatpush.msra.mxu3 %v96_v33 }
 0x4c9   :  { %978 = vmatpush.msra.mxu3 %v95_v37 }
 0x4cb   :  { %v818_v51 = vpop.permute.xlu2 %817  ;;  %979 = vmatpush.msra.mxu3 %v94_v39 }
 0x4cd   :  { %980 = vmatpush.msra.mxu3 %v93_v42 }
 0x4d3   :  { %v824_v46 = vpop.permute.xlu0 %823 }
 0x4d4   :  { %v835_v47 = vsel %vm834_vm7, %v832_v45, %v824_v46 }
 0x4d5   :  { %2115 = vmatmul.msk.f32.vlgmr.msra.gmra.mxu1 %vm102_vm0, %v835_v47 }
 0x4db   :  { %v810_v48 = vpop.permute.xlu1 %809 }
 0x4dc   :  { %v830_v49 = vsel %vm180_vm1, %v2560_v30, %v810_v48 }
 0x4dd   :  { %v833_v53 = vsel %vm831_vm6, %v830_v49, %v818_v51 }
 0x4eb   :  { %v826_v52 = vpop.permute.xlu0 %825 }
 0x4ec   :  { %v836_v54 = vsel %vm834_vm7, %v833_v53, %v826_v52 }
 0x4ed   :  { %2116 = vmatmul.msk.f32.gmra.mxu1 %vm102_vm0, %v836_v54 }
 0x552   :  { %v861_v56 = vpop.f32.mrf.mxu1 }
 0x553   :  { %v862_v57 = vadd.f32 %v861_v56, %v837_v55  ;;  %v91_v56 = vld [vmem:[%s2972_s6 + $0x8] sm:$0xff] }
 0x555   :  { %v867_v58 = vadd.f32 %v862_v57, %v2464_v6  ;;  %v90_v57 = vld [vmem:[%s2972_s6] sm:$0xff] }
 0x557   :  { %v869_v59 = vsel %vm102_vm0, %v867_v58, 0.0 }
 0x558   :  { %870 = vadd.xlane.f32.xlu1 %v869_v59 }
 0x56a   :  { %v864_v60 = vpop.f32.mrf.mxu1 }
 0x56b   :  { %v865_v61 = vadd.f32 %v864_v60, %v837_v55  ;;  %v92_v55 = vld [vmem:[%s2972_s6 + $0x10] sm:$0xff] }
 0x56c   :  { %981 = vmatpush.msra.mxu3 %v92_v55 }
 0x56d   :  { %v868_v30 = vadd.f32 %v865_v61, %v2491_v13 }
 0x56e   :  { %982 = vmatpush.msra.mxu3 %v91_v56 }
 0x56f   :  { %v872_v62 = vsel %vm102_vm0, %v868_v30, 0.0 }
 0x570   :  { %873 = vadd.xlane.f32.xlu2 %v872_v62  ;;  %983 = vmatpush.msra.mxu3 %v90_v57 }
 0x5cb   :  { %v871_v6 = vpop.xlane.xlu1 %870 }
 0x5cc   :  { %v882_v7 = vmul.f32 %v2646_v5, %v871_v6 }
 0x5ce   :  { %v884_v8 = vsub.f32 %v867_v58, %v882_v7  ;;  %v2196_v58 = vld [vmem:[%s2974_s8] ss:$0 sm:$0xff] }
 0x5d0   :  { %v886_v44 = vmul.f32 %v884_v8, %v884_v8 }
 0x5d2   :  { %v888_v13 = vsel %vm102_vm0, %v886_v44, 0.0 }
 0x5d3   :  { %889 = vadd.xlane.f32.xlu0 %v888_v13 }
 0x5e3   :  { %v874_v10 = vpop.xlane.xlu2 %873 }
 0x5e4   :  { %v883_v11 = vmul.f32 %v2646_v5, %v874_v10 }
 0x5e6   :  { %v885_v12 = vsub.f32 %v868_v30, %v883_v11 }
 0x5e8   :  { %v887_v14 = vmul.f32 %v885_v12, %v885_v12 }
 0x5ea   :  { %v891_v15 = vsel %vm102_vm0, %v887_v14, 0.0 }
 0x5eb   :  { %892 = vadd.xlane.f32.xlu1 %v891_v15 }
 0x646   :  { %v890_v21 = vpop.xlane.xlu0 %889 }
 0x647   :  { %v894_v22 = vmul.f32 %v890_v21, %v2646_v5  ;;  %v2128_v21 = vld [vmem:[%s2968_s2 + $0x38] sm:$0xff] }
 0x648   :  { %1125 = vmatpush.msrb.mxu1 %v2128_v21 }
 0x649   :  { %v896_v23 = vadd.f32 1e-05, %v894_v22  ;;  %v2132_v22 = vld [vmem:[%s2969_s3 + $0x38] sm:$0xff] }
 0x64a   :  { %1149 = vmatpush.msrb.mxu2 %v2132_v22 }
 0x64b   :  { %2234 = vrsqrt.f32 %v896_v23  ;;  %vm904_vm10 = vweird.f32 %v896_v23 }
 0x651   :  { %v2235_v24 = vpop.eup %2234 }
 0x652   :  { %v899_v25 = vmul.f32 %v2235_v24, %v896_v23  ;;  %vm905_vm9 = vweird.f32 %v2235_v24  ;;  %v2123_v23 = vld [vmem:[%s2967_s1 + $0x30] sm:$0xff] }
 0x653   :  { %vm906_vm11 = vmor %vm904_vm10, %vm905_vm9  ;;  %1102 = vmatpush.msrb.mxu0 %v2123_v23 }
 0x654   :  { %v900_v27 = vmul.f32 %v2235_v24, %v899_v25  ;;  %v2131_v25 = vld [vmem:[%s2969_s3 + $0x30] sm:$0xff] }
 0x655   :  { %1150 = vmatpush.msrb.mxu2 %v2131_v25 }
 0x656   :  { %v901_v26 = vmul.f32 0.5, %v900_v27  ;;  %v2122_v27 = vld [vmem:[%s2967_s1 + $0x28] sm:$0xff] }
 0x657   :  { %1103 = vmatpush.msrb.mxu0 %v2122_v27 }
 0x658   :  { %v902_v29 = vsub.f32 1.5, %v901_v26  ;;  %v2126_v26 = vld [vmem:[%s2968_s2 + $0x28] sm:$0xff] }
 0x65a   :  { %v903_v28 = vmul.f32 %v2235_v24, %v902_v29  ;;  %v2130_v29 = vld [vmem:[%s2969_s3 + $0x28] sm:$0xff] }
 0x65b   :  { %1151 = vmatpush.msrb.mxu2 %v2130_v29 }
 0x65c   :  { %v907_v35 = vsel %vm906_vm11, %v2235_v24, %v903_v28  ;;  %v2127_v24 = vld [vmem:[%s2968_s2 + $0x30] sm:$0xff]  ;;  %v2121_v28 = vld [vmem:[%s2967_s1 + $0x20] sm:$0xff] }
 0x65d   :  { %v918_v4 = vmul.f32 %v907_v35, %v884_v8  ;;  %1126 = vmatpush.msrb.mxu1 %v2127_v24  ;;  %1104 = vmatpush.msrb.mxu0 %v2121_v28 }
 0x65e   :  { %v893_v9 = vpop.xlane.xlu1 %892  ;;  %1152 = vmatpush.msrb.mxu2 %v2129_v32 }
 0x65f   :  { %v921_v34 = vmul.f32 %v920_v31, %v918_v4  ;;  %v895_v38 = vmul.f32 %v893_v9, %v2646_v5  ;;  %1127 = vmatpush.msrb.mxu1 %v2126_v26 }
 0x661   :  { %v897_v40 = vadd.f32 1e-05, %v895_v38  ;;  %v924_v41 = vadd.f32 %v923_v36, %v921_v34 }
 0x663   :  { %2236 = vrsqrt.f32 %v897_v40  ;;  %2117 = vmatmul.msk.f32.vlgmr.msra.gmra.mxu2 %vm102_vm0, %v924_v41  ;;  %vm914_vm13 = vweird.f32 %v897_v40 }
 0x669   :  { %v2237_v43 = vpop.eup %2236 }
 0x66a   :  { %v909_v45 = vmul.f32 %v2237_v43, %v897_v40  ;;  %vm915_vm12 = vweird.f32 %v2237_v43  ;;  %v2286_v40 = vld [vmem:[%s2973_s7] sm:$0xff] }
 0x66b   :  { %vm916_vm14 = vmor %vm914_vm13, %vm915_vm12 }
 0x66c   :  { %v910_v46 = vmul.f32 %v2237_v43, %v909_v45  ;;  %v2197_v45 = vld [vmem:[%s2973_s7 + $0x8] ss:$0 sm:$0xff] }
 0x66e   :  { %v911_v47 = vmul.f32 0.5, %v910_v46 }
 0x670   :  { %v912_v48 = vsub.f32 1.5, %v911_v47 }
 0x672   :  { %v913_v49 = vmul.f32 %v2237_v43, %v912_v48 }
 0x674   :  { %v917_v51 = vsel %vm916_vm14, %v2237_v43, %v913_v49 }
 0x675   :  { %v919_v52 = vmul.f32 %v917_v51, %v885_v12 }
 0x677   :  { %v922_v53 = vmul.f32 %v920_v31, %v919_v52  ;;  %v2125_v31 = vld [vmem:[%s2968_s2 + $0x20] sm:$0xff] }
 0x678   :  { %1128 = vmatpush.msrb.mxu1 %v2125_v31 }
 0x679   :  { %v925_v54 = vadd.f32 %v923_v36, %v922_v53 }
 0x67b   :  { %2118 = vmatmul.msk.f32.gmra.mxu2 %vm102_vm0, %v925_v54 }
 0x6e6   :  { %v952_v59 = vpop.f32.mrf.mxu2 }
 0x6e7   :  { %v953_v60 = vadd.f32 %v2196_v58, %v952_v59 }
 0x6e9   :  { %v958_v61 = vmax.f32 %v953_v60, 0.0 }
 0x6eb   :  { %2119 = vmatmul.msk.f32.vlgmr.msra.gmra.mxu3 %vm961_vm15, %v958_v61 }
 0x6fe   :  { %v955_v30 = vpop.f32.mrf.mxu2 }
 0x6ff   :  { %v956_v62 = vadd.f32 %v2196_v58, %v955_v30  ;;  %v2762_v30 = vld [vmem:[%s2973_s7 + $0x10] sm:$0xff] }
 0x701   :  { %v959_v50 = vmax.f32 %v956_v62, 0.0  ;;  %v1082_v62 = vperm.slane %v2762_v30, 0 }
 0x703   :  { %2120 = vmatmul.msk.f32.gmra.mxu3 %vm961_vm15, %v959_v50  ;;  %v1112_v50 = vperm.slane %v2762_v30, 1 }
 0x76e   :  { %v985_v0 = vpop.f32.mrf.mxu3 }
 0x76f   :  { %v986_v1 = vadd.f32 %v985_v0, %v960_v63 }
 0x771   :  { %v991_v2 = vadd.f32 %v986_v1, %v924_v41  ;;  %v1037_v41 = vperm.slane %v2286_v40, 7 }
 0x773   :  { %v993_v3 = vsel %vm102_vm0, %v991_v2, 0.0 }
 0x774   :  { %994 = vadd.xlane.f32.xlu2 %v993_v3  ;;  %v1136_v3 = vperm.slane %v2762_v30, 2 }
 0x786   :  { %v988_v6 = vpop.f32.mrf.mxu3 }
 0x787   :  { %v989_v7 = vadd.f32 %v988_v6, %v960_v63 }
 0x789   :  { %v992_v8 = vadd.f32 %v989_v7, %v925_v54 }
 0x78b   :  { %v996_v44 = vsel %vm102_vm0, %v992_v8, 0.0 }
 0x78c   :  { %997 = vadd.xlane.f32.xlu0 %v996_v44 }
 0x7e7   :  { %v995_v13 = vpop.xlane.xlu2 %994 }
 0x7e8   :  { %v999_v10 = vmul.f32 %v995_v13, %v2646_v5 }
 0x7ea   :  { %v1001_v11 = vsub.f32 %v991_v2, %v999_v10 }
 0x7ec   :  { %v1003_v12 = vmul.f32 %v1001_v11, %v1001_v11 }
 0x7ee   :  { %v1005_v14 = vsel %vm102_vm0, %v1003_v12, 0.0 }
 0x7ef   :  { %1006 = vadd.xlane.f32.xlu1 %v1005_v14 }
 0x7ff   :  { %v998_v16 = vpop.xlane.xlu0 %997 }
 0x800   :  { %v1000_v15 = vmul.f32 %v998_v16, %v2646_v5 }
 0x802   :  { %v2693_v17 = vsub.f32 %v992_v8, %v1000_v15 }
 0x804   :  { %v1004_v18 = vmul.f32 %v2693_v17, %v2693_v17 }
 0x806   :  { %v1008_v19 = vsel %vm102_vm0, %v1004_v18, 0.0 }
 0x807   :  { %1009 = vadd.xlane.f32.xlu2 %v1008_v19 }
 0x862   :  { %v1007_v33 = vpop.xlane.xlu1 %1006 }
 0x863   :  { %v1011_v35 = vmul.f32 %v1007_v33, %v2646_v5 }
 0x865   :  { %v1013_v4 = vadd.f32 1e-05, %v1011_v35 }
 0x867   :  { %2238 = vrsqrt.f32 %v1013_v4  ;;  %vm1021_vm3 = vweird.f32 %v1013_v4 }
 0x86d   :  { %v2239_v36 = vpop.eup %2238 }
 0x86e   :  { %v1016_v37 = vmul.f32 %v2239_v36, %v1013_v4  ;;  %vm1022_vm2 = vweird.f32 %v2239_v36 }
 0x86f   :  { %vm1023_vm4 = vmor %vm1021_vm3, %vm1022_vm2 }
 0x870   :  { %v1017_v9 = vmul.f32 %v2239_v36, %v1016_v37 }
 0x872   :  { %v1018_v34 = vmul.f32 0.5, %v1017_v9 }
 0x874   :  { %v1019_v38 = vsub.f32 1.5, %v1018_v34 }
 0x876   :  { %v1020_v39 = vmul.f32 %v2239_v36, %v1019_v38 }
 0x878   :  { %v1024_v42 = vsel %vm1023_vm4, %v2239_v36, %v1020_v39 }
 0x879   :  { %v1035_v43 = vmul.f32 %v1024_v42, %v1001_v11 }
 0x87a   :  { %v1010_v46 = vpop.xlane.xlu2 %1009 }
 0x87b   :  { %v1038_v47 = vmul.f32 %v1037_v41, %v1035_v43  ;;  %v1012_v48 = vmul.f32 %v1010_v46, %v2646_v5 }
 0x87d   :  { %v1014_v49 = vadd.f32 1e-05, %v1012_v48  ;;  %v2742_v51 = vadd.f32 %v2197_v45, %v1038_v47 }
 0x87f   :  { %2240 = vrsqrt.f32 %v1014_v49  ;;  %2144 = vmatmul.msk.f32.vlgmr.msrb.gmra.mxu0 %vm102_vm0, %v2742_v51  ;;  %2146 = vmatmul.msk.f32.vlgmr.msrb.gmra.mxu1 %vm102_vm0, %v2742_v51  ;;  %vm1031_vm8 = vweird.f32 %v1014_v49 }
 0x880   :  { %2148 = vmatmul.msk.f32.vlgmr.msrb.gmra.mxu2 %vm102_vm0, %v2742_v51 }
 0x885   :  { %v2241_v52 = vpop.eup %2240 }
 0x886   :  { %v1026_v53 = vmul.f32 %v2241_v52, %v1014_v49  ;;  %vm1032_vm5 = vweird.f32 %v2241_v52 }
 0x887   :  { %vm1033_vm9 = vmor %vm1031_vm8, %vm1032_vm5 }
 0x888   :  { %v1027_v54 = vmul.f32 %v2241_v52, %v1026_v53 }
 0x88a   :  { %v1028_v55 = vmul.f32 0.5, %v1027_v54 }
 0x88c   :  { %v1029_v56 = vsub.f32 1.5, %v1028_v55 }
 0x88e   :  { %v1030_v57 = vmul.f32 %v2241_v52, %v1029_v56 }
 0x890   :  { %v1034_v58 = vsel %vm1033_vm9, %v2241_v52, %v1030_v57 }
 0x891   :  { %v1036_v59 = vmul.f32 %v1034_v58, %v2693_v17 }
 0x893   :  { %v1039_v60 = vmul.f32 %v1037_v41, %v1036_v59 }
 0x895   :  { %v2751_v61 = vadd.f32 %v2197_v45, %v1039_v60 }
 0x897   :  { %2145 = vmatmul.msk.f32.gmra.mxu0 %vm102_vm0, %v2751_v61  ;;  %2147 = vmatmul.msk.f32.gmra.mxu1 %vm102_vm0, %v2751_v61 }
 0x898   :  { %2149 = vmatmul.msk.f32.gmra.mxu2 %vm102_vm0, %v2751_v61 }
 0x8fc   :  { %v1106_v63 = vpop.f32.mrf.mxu0  ;;  %v1130_v0 = vpop.f32.mrf.mxu1 }
 0x8fd   :  { %v1107_v1 = vadd.f32 %v1106_v63, %v1082_v62  ;;  %v1131_v2 = vadd.f32 %v1130_v0, %v1112_v50 }
 0x8ff   :  { %1310 = vrot.lane.b32.xlu0 %v1131_v2, %s2369_s0  ;;  %2150 = vmatpush.xpose.msk.msra.mxu0 %vm180_vm1, %v1131_v2 }
 0x900   :  { %1308 = vrot.lane.b32.xlu1 %v1107_v1, %s2369_s0 }
 0x902   :  { %2151 = vmatmul.msk.f32.vlgmr.msra.gmra.mxu0 %vm180_vm1, %v1107_v1 }
 0x903   :  { %v1154_v6 = vpop.f32.mrf.mxu2 }
 0x904   :  { %v2771_v7 = vadd.f32 %v1154_v6, %v1136_v3 }
 0x906   :  { %1280 = vmatpush.msrb.mxu0 %v2771_v7 }
 0x907   :  { %1470 = vrot.lane.b32.xlu0 %v1131_v2, %s2370_s13 }
 0x90f   :  { %1468 = vrot.lane.b32.xlu0 %v1107_v1, %s2370_s13 }
 0x914   :  { %v1109_v8 = vpop.f32.mrf.mxu0  ;;  %v1133_v44 = vpop.f32.mrf.mxu1 }
 0x915   :  { %v1110_v13 = vadd.f32 %v1109_v8, %v1082_v62  ;;  %v1134_v10 = vadd.f32 %v1133_v44, %v1112_v50 }
 0x917   :  { %1338 = vrot.lane.b32.xlu2 %v1134_v10, %s2369_s0  ;;  %2152 = vmatpush.xpose.msk.msrb.mxu3 %vm180_vm1, %v1134_v10 }
 0x918   :  { %1496 = vrot.lane.b32.xlu0 %v1110_v13, %s2370_s13  ;;  %1336 = vrot.lane.b32.xlu1 %v1110_v13, %s2369_s0 }
 0x91a   :  { %2153 = vmatmul.msk.f32.vlgmr.msrb.gmra.mxu3 %vm180_vm1, %v1110_v13 }
 0x91b   :  { %v1157_v11 = vpop.f32.mrf.mxu2 }
 0x91c   :  { %v2781_v12 = vadd.f32 %v1157_v11, %v1136_v3 }
 0x91e   :  { %1303 = vmatpush.msra.mxu1 %v2781_v12  ;;  %v2191_v57 = vpack.i.bf16 %v2781_v12, %v2771_v7 }
 0x91f   :  { %1498 = vrot.lane.b32.xlu2 %v1134_v10, %s2370_s13 }
 0x920   :  { %1654 = vrot.lane.b32.xlu0 %v1110_v13, %s2371_s14  ;;  %1628 = vrot.lane.b32.xlu1 %v1131_v2, %s2371_s14 }
 0x927   :  { %1626 = vrot.lane.b32.xlu2 %v1107_v1, %s2371_s14 }
 0x928   :  { %1656 = vrot.lane.b32.xlu1 %v1134_v10, %s2371_s14 }
 0x971   :  { %v1311_v14 = vpop.permute.xlu0 %1310  ;;  %v1339_v16 = vpop.permute.xlu2 %1338 }
 0x972   :  { %2156 = vmatpush.xpose.msk.msra.mxu2 %vm180_vm1, %v1311_v14  ;;  %2158 = vmatpush.xpose.msk.msra.mxu3 %vm180_vm1, %v1339_v16  ;;  %v1309_v15 = vpop.permute.xlu1 %1308 }
 0x975   :  { %2157 = vmatmul.msk.f32.vlgmr.msra.gmra.mxu2 %vm180_vm1, %v1309_v15 }
 0x979   :  { %v1471_v17 = vpop.permute.xlu0 %1470  ;;  %v1499_v18 = vpop.permute.xlu2 %1498 }
 0x97a   :  { %2162 = vmatpush.xpose.msk.msrb.mxu2 %vm180_vm1, %v1471_v17  ;;  %2164 = vmatpush.xpose.msk.msrb.mxu3 %vm180_vm1, %v1499_v18 }
 0x97f   :  { %v1183_v19 = vpop.f32.mrf.mxu0 }
 0x980   :  { %v1212_v20 = vmul.f32 0.35355338, %v1183_v19 }
 0x981   :  { %v1469_v21 = vpop.permute.xlu0 %1468  ;;  %v1627_v27 = vpop.permute.xlu2 %1626 }
 0x982   :  { %2163 = vmatmul.msk.f32.vlgmr.msrb.gmra.mxu2 %vm180_vm1, %v1469_v21  ;;  %v1214_v22 = vsel %vm180_vm1, %v1212_v20, -inf }
 0x983   :  { %1215 = vmax.xlane.f32.xlu2 %v1214_v22 }
 0x98a   :  { %v1337_v23 = vpop.permute.xlu1 %1336  ;;  %v1497_v24 = vpop.permute.xlu0 %1496 }
 0x98b   :  { %2159 = vmatmul.msk.f32.vlgmr.msra.gmra.mxu3 %vm180_vm1, %v1337_v23 }
 0x992   :  { %v1629_v25 = vpop.permute.xlu1 %1628  ;;  %v1655_v29 = vpop.permute.xlu0 %1654 }
 0x993   :  { %2165 = vmatmul.msk.f32.vlgmr.msrb.gmra.mxu3 %vm180_vm1, %v1497_v24  ;;  %2168 = vmatpush.xpose.msk.msra.mxu2 %vm180_vm1, %v1629_v25 }
 0x996   :  { %2169 = vmatmul.msk.f32.vlgmr.msra.gmra.mxu2 %vm180_vm1, %v1627_v27 }
 0x99a   :  { %v1657_v26 = vpop.permute.xlu1 %1656 }
 0x99b   :  { %2170 = vmatpush.xpose.msk.msra.mxu3 %vm180_vm1, %v1657_v26 }
 0x99d   :  { %v1209_v28 = vpop.f32.mrf.mxu3 }
 0x99e   :  { %v1213_v31 = vmul.f32 0.35355338, %v1209_v28  ;;  %2171 = vmatmul.msk.f32.vlgmr.msra.gmra.mxu3 %vm180_vm1, %v1655_v29 }
 0x9a0   :  { %v1217_v32 = vsel %vm180_vm1, %v1213_v31, -inf }
 0x9a1   :  { %1218 = vmax.xlane.f32.xlu1 %v1217_v32 }
 0x9f6   :  { %v1216_v33 = vpop.xlane.xlu2 %1215 }
 0x9f7   :  { %v1220_v35 = vsub.f32 %v1212_v20, %v1216_v33 }
 0x9f8   :  { %v1333_v4 = vpop.f32.mrf.mxu2 }
 0x9f9   :  { %v1222_v36 = vmul.f32 1.442695, %v1220_v35  ;;  %v1364_v37 = vmul.f32 0.35355338, %v1333_v4 }
 0x9fb   :  { %2242 = vpow2.f32 %v1222_v36  ;;  %v1366_v9 = vsel %vm180_vm1, %v1364_v37, -inf }
 0x9fc   :  { %1367 = vmax.xlane.f32.xlu0 %v1366_v9 }
 0xa01   :  { %v2804_v34 = vpop.eup %2242 }
 0xa02   :  { %v1226_v38 = vsel %vm180_vm1, %v2804_v34, 0.0 }
 0xa04   :  { %1227 = vadd.xlane.f32.xlu0 %v1226_v38 }
 0xa05   :  { %v1493_v39 = vpop.f32.mrf.mxu2 }
 0xa06   :  { %v1524_v40 = vmul.f32 0.35355338, %v1493_v39 }
 0xa08   :  { %v1526_v41 = vsel %vm180_vm1, %v1524_v40, -inf }
 0xa09   :  { %1527 = vmax.xlane.f32.xlu1 %v1526_v41 }
 0xa0e   :  { %v1361_v42 = vpop.f32.mrf.mxu3 }
 0xa0f   :  { %v1365_v43 = vmul.f32 0.35355338, %v1361_v42 }
 0xa11   :  { %v1369_v45 = vsel %vm180_vm1, %v1365_v43, -inf }
 0xa12   :  { %1370 = vmax.xlane.f32.xlu2 %v1369_v45 }
 0xa14   :  { %v1219_v58 = vpop.xlane.xlu1 %1218 }
 0xa15   :  { %v1221_v59 = vsub.f32 %v1213_v31, %v1219_v58 }
 0xa16   :  { %v1521_v46 = vpop.f32.mrf.mxu3 }
 0xa17   :  { %v1525_v47 = vmul.f32 0.35355338, %v1521_v46  ;;  %v1224_v60 = vmul.f32 1.442695, %v1221_v59 }
 0xa19   :  { %v1651_v48 = vpop.f32.mrf.mxu2  ;;  %v1529_v49 = vsel %vm180_vm1, %v1525_v47, -inf  ;;  %2244 = vpow2.f32 %v1224_v60 }
 0xa1a   :  { %v2811_v52 = vmul.f32 0.35355338, %v1651_v48  ;;  %1530 = vmax.xlane.f32.xlu0 %v1529_v49 }
 0xa1c   :  { %v1684_v53 = vsel %vm180_vm1, %v2811_v52, -inf }
 0xa1d   :  { %1685 = vmax.xlane.f32.xlu2 %v1684_v53 }
 0xa1f   :  { %v2824_v62 = vpop.eup %2244 }
 0xa20   :  { %v1229_v50 = vsel %vm180_vm1, %v2824_v62, 0.0 }
 0xa21   :  { %v1679_v54 = vpop.f32.mrf.mxu3 }
 0xa22   :  { %v2815_v55 = vmul.f32 0.35355338, %v1679_v54 }
 0xa24   :  { %v1687_v56 = vsel %vm180_vm1, %v2815_v55, -inf }
 0xa25   :  { %1688 = vmax.xlane.f32.xlu1 %v1687_v56 }
 0xa2e   :  { %1574 = vrot.lane.b32.xlu0 %v2771_v7, %s2370_s13 }
 0xa35   :  { %2192 = vrot.lane.b32.xlu2 %v2191_v57, %s2369_s0 }
 0xa5e   :  { %1230 = vadd.xlane.f32.xlu2 %v1229_v50 }
 0xa6f   :  { %v1368_v63 = vpop.xlane.xlu0 %1367 }
 0xa70   :  { %v1372_v0 = vsub.f32 %v1364_v37, %v1368_v63 }
 0xa72   :  { %v1374_v1 = vmul.f32 1.442695, %v1372_v0 }
 0xa74   :  { %2246 = vpow2.f32 %v1374_v1 }
 0xa77   :  { %v1228_v2 = vpop.xlane.xlu0 %1227 }
 0xa78   :  { %2248 = vrcp.f32 %v1228_v2  ;;  %v1243_v16 = vand.u32 2147483648, %v1228_v2  ;;  %v1241_v17 = vand.u32 2147483647, %v1228_v2  ;;  %vm1237_vm11 = vweird.f32 %v1228_v2 }
 0xa7a   :  { %v2828_v3 = vpop.eup %2246  ;;  %v1244_v20 = vor.u32 1.1754944e-38, %v1243_v16  ;;  %vm1242_vm13 = vcmp.eq.f32.partialorder %v1241_v17, 8.507059e+37 }
 0xa7b   :  { %v1378_v6 = vsel %vm180_vm1, %v2828_v3, 0.0 }
 0xa7c   :  { %1379 = vadd.xlane.f32.xlu1 %v1378_v6  ;;  %v1528_v8 = vpop.xlane.xlu1 %1527 }
 0xa7d   :  { %v1532_v44 = vsub.f32 %v1524_v40, %v1528_v8 }
 0xa7e   :  { %v2249_v13 = vpop.eup %2248 }
 0xa7f   :  { %v1233_v10 = vmul.f32 %v2249_v13, %v1228_v2  ;;  %v1534_v11 = vmul.f32 1.442695, %v1532_v44  ;;  %vm1238_vm10 = vweird.f32 %v2249_v13 }
 0xa80   :  { %vm1239_vm12 = vmor %vm1237_vm11, %vm1238_vm10 }
 0xa81   :  { %v1234_v14 = vsub.f32 1.0, %v1233_v10  ;;  %2250 = vpow2.f32 %v1534_v11 }
 0xa83   :  { %v1235_v15 = vmul.f32 %v2249_v13, %v1234_v14 }
 0xa85   :  { %v1236_v18 = vadd.f32 %v2249_v13, %v1235_v15  ;;  %v1371_v19 = vpop.xlane.xlu2 %1370 }
 0xa86   :  { %v1373_v21 = vsub.f32 %v1365_v43, %v1371_v19 }
 0xa87   :  { %v2832_v22 = vpop.eup %2250  ;;  %v1240_v23 = vsel %vm1239_vm12, %v2249_v13, %v1236_v18 }
 0xa88   :  { %v1245_v24 = vsel %vm1242_vm13, %v1244_v20, %v1240_v23  ;;  %v1376_v25 = vmul.f32 1.442695, %v1373_v21  ;;  %v1538_v27 = vsel %vm180_vm1, %v2832_v22, 0.0 }
 0xa89   :  { %1539 = vadd.xlane.f32.xlu2 %v1538_v27  ;;  %v1260_v26 = vmul.f32 %v2804_v34, %v1245_v24 }
 0xa8a   :  { %2252 = vpow2.f32 %v1376_v25 }
 0xa8b   :  { %2154 = vmatmul.msk.f32.vlgmr.msrb.gmra.mxu0 %vm180_vm1, %v1260_v26 }
 0xa8d   :  { %v1531_v29 = vpop.xlane.xlu0 %1530 }
 0xa8e   :  { %v1533_v28 = vsub.f32 %v1525_v47, %v1531_v29 }
 0xa90   :  { %v2838_v31 = vpop.eup %2252  ;;  %v1536_v32 = vmul.f32 1.442695, %v1533_v28  ;;  %v1686_v33 = vpop.xlane.xlu2 %1685 }
 0xa91   :  { %v1690_v35 = vsub.f32 %v2811_v52, %v1686_v33  ;;  %v1381_v4 = vsel %vm180_vm1, %v2838_v31, 0.0 }
 0xa92   :  { %2254 = vpow2.f32 %v1536_v32  ;;  %1382 = vadd.xlane.f32.xlu0 %v1381_v4 }
 0xa93   :  { %v1692_v36 = vmul.f32 1.442695, %v1690_v35 }
 0xa95   :  { %2256 = vpow2.f32 %v1692_v36 }
 0xa98   :  { %v2843_v37 = vpop.eup %2254  ;;  %v2193_v9 = vpop.permute.xlu2 %2192 }
 0xa99   :  { %v1689_v34 = vpop.xlane.xlu1 %1688  ;;  %v2195_v38 = vunpack.i.h.bf16 %v2193_v9  ;;  %v2194_v39 = vunpack.i.l.bf16 %v2193_v9  ;;  %v1541_v41 = vsel %vm180_vm1, %v2843_v37, 0.0 }
 0xa9a   :  { %v1691_v40 = vsub.f32 %v2815_v55, %v1689_v34  ;;  %1542 = vadd.xlane.f32.xlu1 %v1541_v41 }
 0xa9b   :  { %v2848_v42 = vpop.eup %2256  ;;  %1436 = vmatpush.msra.mxu0 %v2194_v39  ;;  %1463 = vmatpush.msrb.mxu1 %v2195_v38 }
 0xa9c   :  { %v1694_v43 = vmul.f32 1.442695, %v1691_v40  ;;  %v1696_v45 = vsel %vm180_vm1, %v2848_v42, 0.0 }
 0xa9d   :  { %1697 = vadd.xlane.f32.xlu0 %v1696_v45 }
 0xa9e   :  { %2258 = vpow2.f32 %v1694_v43 }
 0xaa0   :  { %v1575_v46 = vpop.permute.xlu0 %1574 }
 0xaa1   :  { %1595 = vmatpush.msrb.mxu0 %v1575_v46  ;;  %1732 = vrot.lane.b32.xlu2 %v2771_v7, %s2371_s14 }
 0xaa4   :  { %v2854_v47 = vpop.eup %2258 }
 0xaa5   :  { %v1699_v48 = vsel %vm180_vm1, %v2854_v47, 0.0 }
 0xaa6   :  { %1700 = vadd.xlane.f32.xlu1 %v1699_v48 }
 0xab1   :  { %1758 = vrot.lane.b32.xlu0 %v2781_v12, %s2371_s14 }
 0xabf   :  { %1600 = vrot.lane.b32.xlu1 %v2781_v12, %s2370_s13 }
 0xad1   :  { %v1231_v49 = vpop.xlane.xlu2 %1230 }
 0xad2   :  { %2260 = vrcp.f32 %v1231_v49  ;;  %v1257_v55 = vand.u32 2147483648, %v1231_v49  ;;  %v1255_v7 = vand.u32 2147483647, %v1231_v49  ;;  %vm1251_vm2 = vweird.f32 %v1231_v49 }
 0xad4   :  { %v1258_v58 = vor.u32 1.1754944e-38, %v1257_v55  ;;  %vm1256_vm4 = vcmp.eq.f32.partialorder %v1255_v7, 8.507059e+37 }
 0xad8   :  { %v2261_v52 = vpop.eup %2260 }
 0xad9   :  { %v1247_v53 = vmul.f32 %v2261_v52, %v1231_v49  ;;  %vm1252_vm14 = vweird.f32 %v2261_v52 }
 0xada   :  { %vm1253_vm3 = vmor %vm1251_vm2, %vm1252_vm14 }
 0xadb   :  { %v1248_v54 = vsub.f32 1.0, %v1247_v53 }
 0xadd   :  { %v1249_v56 = vmul.f32 %v2261_v52, %v1248_v54 }
 0xadf   :  { %v1250_v57 = vadd.f32 %v2261_v52, %v1249_v56 }
 0xae1   :  { %v1254_v59 = vsel %vm1253_vm3, %v2261_v52, %v1250_v57 }
 0xae2   :  { %v1259_v60 = vsel %vm1256_vm4, %v1258_v58, %v1254_v59 }
 0xae3   :  { %v1261_v50 = vmul.f32 %v2824_v62, %v1259_v60 }
 0xae5   :  { %2155 = vmatmul.msk.f32.vlgmr.msra.gmra.mxu1 %vm180_vm1, %v1261_v50 }
 0xaef   :  { %v1380_v12 = vpop.xlane.xlu1 %1379 }
 0xaf0   :  { %2262 = vrcp.f32 %v1380_v12  ;;  %v1395_v2 = vand.u32 2147483648, %v1380_v12  ;;  %v1393_v8 = vand.u32 2147483647, %v1380_v12  ;;  %vm1389_vm8 = vweird.f32 %v1380_v12 }
 0xaf2   :  { %v1396_v10 = vor.u32 1.1754944e-38, %v1395_v2  ;;  %vm1394_vm10 = vcmp.eq.f32.partialorder %v1393_v8, 8.507059e+37 }
 0xaf6   :  { %v2263_v63 = vpop.eup %2262 }
 0xaf7   :  { %v1385_v0 = vmul.f32 %v2263_v63, %v1380_v12  ;;  %vm1390_vm5 = vweird.f32 %v2263_v63 }
 0xaf8   :  { %vm1391_vm9 = vmor %vm1389_vm8, %vm1390_vm5 }
 0xaf9   :  { %v1386_v1 = vsub.f32 1.0, %v1385_v0 }
 0xafb   :  { %v1387_v6 = vmul.f32 %v2263_v63, %v1386_v1 }
 0xafc   :  { %v1540_v44 = vpop.xlane.xlu2 %1539 }
 0xafd   :  { %v1388_v13 = vadd.f32 %v2263_v63, %v1387_v6  ;;  %2264 = vrcp.f32 %v1540_v44  ;;  %v1555_v20 = vand.u32 2147483648, %v1540_v44  ;;  %v1553_v23 = vand.u32 2147483647, %v1540_v44 }
 0xafe   :  { %vm1549_vm12 = vweird.f32 %v1540_v44 }
 0xaff   :  { %v1392_v11 = vsel %vm1391_vm9, %v2263_v63, %v1388_v13  ;;  %v1556_v25 = vor.u32 1.1754944e-38, %v1555_v20  ;;  %vm1554_vm14 = vcmp.eq.f32.partialorder %v1553_v23, 8.507059e+37 }
 0xb00   :  { %v1397_v62 = vsel %vm1394_vm10, %v1396_v10, %v1392_v11 }
 0xb01   :  { %v1412_v14 = vmul.f32 %v2828_v3, %v1397_v62 }
 0xb03   :  { %v2265_v16 = vpop.eup %2264  ;;  %2160 = vmatmul.msk.f32.vlgmr.msra.gmra.mxu0 %vm180_vm1, %v1412_v14 }
 0xb04   :  { %v1545_v15 = vmul.f32 %v2265_v16, %v1540_v44  ;;  %v1733_v17 = vpop.permute.xlu2 %1732  ;;  %vm1550_vm11 = vweird.f32 %v2265_v16 }
 0xb05   :  { %v1383_v18 = vpop.xlane.xlu0 %1382  ;;  %1753 = vmatpush.msra.mxu0 %v1733_v17  ;;  %vm1551_vm13 = vmor %vm1549_vm12, %vm1550_vm11 }
 0xb06   :  { %v1546_v19 = vsub.f32 1.0, %v1545_v15  ;;  %2266 = vrcp.f32 %v1383_v18  ;;  %v1409_v35 = vand.u32 2147483648, %v1383_v18  ;;  %v1407_v9 = vand.u32 2147483647, %v1383_v18 }
 0xb07   :  { %vm1403_vm3 = vweird.f32 %v1383_v18 }
 0xb08   :  { %v1547_v21 = vmul.f32 %v2265_v16, %v1546_v19  ;;  %v1410_v38 = vor.u32 1.1754944e-38, %v1409_v35  ;;  %vm1408_vm5 = vcmp.eq.f32.partialorder %v1407_v9, 8.507059e+37  ;;  %v1282_v19 = vpop.f32.mrf.mxu0 }
 0xb0a   :  { %v1548_v24 = vadd.f32 %v2265_v16, %v1547_v21 }
 0xb0c   :  { %v2267_v27 = vpop.eup %2266  ;;  %v1552_v26 = vsel %vm1551_vm13, %v2265_v16, %v1548_v24 }
 0xb0d   :  { %v1557_v3 = vsel %vm1554_vm14, %v1556_v25, %v1552_v26  ;;  %v1399_v29 = vmul.f32 %v2267_v27, %v1383_v18  ;;  %v1543_v28 = vpop.xlane.xlu1 %1542  ;;  %vm1404_vm2 = vweird.f32 %v2267_v27  ;;  %v1061_v26 = vld [vmem:[#allocation2 + $0x30] sm:$0xff] }
 0xb0e   :  { %v1572_v33 = vmul.f32 %v2832_v22, %v1557_v3  ;;  %2268 = vrcp.f32 %v1543_v28  ;;  %vm1405_vm4 = vmor %vm1403_vm3, %vm1404_vm2  ;;  %v1569_v0 = vand.u32 2147483648, %v1543_v28  ;;  %vm1563_vm13 = vweird.f32 %v1543_v28  ;;  %v1060_v3 = vld [vmem:[#allocation2 + $0x28] sm:$0xff] }
 0xb0f   :  { %v1400_v32 = vsub.f32 1.0, %v1399_v29  ;;  %v1567_v1 = vand.u32 2147483647, %v1543_v28  ;;  %v1059_v29 = vld [vmem:[#allocation2 + $0x20] sm:$0xff] }
 0xb10   :  { %v1698_v4 = vpop.xlane.xlu0 %1697  ;;  %2166 = vmatmul.msk.f32.vlgmr.msrb.gmra.mxu0 %vm180_vm1, %v1572_v33  ;;  %v1570_v8 = vor.u32 1.1754944e-38, %v1569_v0  ;;  %v1064_v0 = vld [vmem:[#allocation5 + $0x20] sm:$0xff] }
 0xb11   :  { %v1401_v36 = vmul.f32 %v2267_v27, %v1400_v32  ;;  %2270 = vrcp.f32 %v1698_v4  ;;  %v1713_v52 = vand.u32 2147483648, %v1698_v4  ;;  %v1711_v54 = vand.u32 2147483647, %v1698_v4 }
 0xb12   :  { %vm1707_vm9 = vweird.f32 %v1698_v4  ;;  %vm1568_vm2 = vcmp.eq.f32.partialorder %v1567_v1, 8.507059e+37 }
 0xb13   :  { %v1402_v34 = vadd.f32 %v2267_v27, %v1401_v36  ;;  %v1714_v57 = vor.u32 1.1754944e-38, %v1713_v52  ;;  %vm1712_vm11 = vcmp.eq.f32.partialorder %v1711_v54, 8.507059e+37 }
 0xb14   :  { %v2269_v40 = vpop.eup %2268 }
 0xb15   :  { %v1406_v39 = vsel %vm1405_vm4, %v2267_v27, %v1402_v34  ;;  %v1559_v48 = vmul.f32 %v2269_v40, %v1543_v28  ;;  %vm1564_vm12 = vweird.f32 %v2269_v40  ;;  %v1062_v27 = vld [vmem:[#allocation2 + $0x38] sm:$0xff] }
 0xb16   :  { %v1411_v41 = vsel %vm1408_vm5, %v1410_v38, %v1406_v39  ;;  %vm1565_vm14 = vmor %vm1563_vm13, %vm1564_vm12  ;;  %1833 = vmatpush.msrb.mxu2 %v1062_v27 }
 0xb17   :  { %v2271_v43 = vpop.eup %2270  ;;  %v1413_v22 = vmul.f32 %v2838_v31, %v1411_v41  ;;  %v1560_v55 = vsub.f32 1.0, %v1559_v48 }
 0xb18   :  { %v1703_v45 = vmul.f32 %v2271_v43, %v1698_v4  ;;  %vm1708_vm8 = vweird.f32 %v2271_v43  ;;  %1834 = vmatpush.msrb.mxu2 %v1061_v26 }
 0xb19   :  { %v1701_v46 = vpop.xlane.xlu1 %1700  ;;  %2161 = vmatmul.msk.f32.vlgmr.msrb.gmra.mxu1 %vm180_vm1, %v1413_v22  ;;  %vm1709_vm10 = vmor %vm1707_vm9, %vm1708_vm8  ;;  %v1561_v59 = vmul.f32 %v2269_v40, %v1560_v55 }
 0xb1a   :  { %2272 = vrcp.f32 %v1701_v46  ;;  %v1704_v49 = vsub.f32 1.0, %v1703_v45  ;;  %v1727_v10 = vand.u32 2147483648, %v1701_v46  ;;  %vm1721_vm4 = vweird.f32 %v1701_v46  ;;  %1835 = vmatpush.msrb.mxu2 %v1060_v3 }
 0xb1b   :  { %v1562_v12 = vadd.f32 %v2269_v40, %v1561_v59  ;;  %v1725_v11 = vand.u32 2147483647, %v1701_v46 }
 0xb1c   :  { %v1705_v53 = vmul.f32 %v2271_v43, %v1704_v49  ;;  %v1728_v15 = vor.u32 1.1754944e-38, %v1727_v10  ;;  %1836 = vmatpush.msrb.mxu2 %v1059_v29 }
 0xb1d   :  { %v1566_v2 = vsel %vm1565_vm14, %v2269_v40, %v1562_v12  ;;  %vm1726_vm8 = vcmp.eq.f32.partialorder %v1725_v11, 8.507059e+37  ;;  %v1066_v12 = vld [vmem:[#allocation5 + $0x30] sm:$0xff] }
 0xb1e   :  { %v1706_v56 = vadd.f32 %v2271_v43, %v1705_v53  ;;  %v1571_v44 = vsel %vm1568_vm2, %v1570_v8, %v1566_v2 }
 0xb1f   :  { %v1573_v62 = vmul.f32 %v2843_v37, %v1571_v44 }
 0xb20   :  { %v2273_v7 = vpop.eup %2272  ;;  %v1710_v58 = vsel %vm1709_vm10, %v2271_v43, %v1706_v56  ;;  %v1814_v43 = vperm.slane %v2762_v30, 3 }
 0xb21   :  { %v1715_v31 = vsel %vm1712_vm11, %v1714_v57, %v1710_v58  ;;  %v1717_v60 = vmul.f32 %v2273_v7, %v1701_v46  ;;  %vm1722_vm3 = vweird.f32 %v2273_v7 }
 0xb22   :  { %v1730_v50 = vmul.f32 %v2848_v42, %v1715_v31  ;;  %vm1723_vm5 = vmor %vm1721_vm4, %vm1722_vm3 }
 0xb23   :  { %v1718_v63 = vsub.f32 1.0, %v1717_v60  ;;  %v1759_v16 = vpop.permute.xlu0 %1758 }
 0xb24   :  { %2172 = vmatmul.msk.f32.vlgmr.msra.gmra.mxu0 %vm180_vm1, %v1730_v50 }
 0xb25   :  { %v1719_v6 = vmul.f32 %v2273_v7, %v1718_v63  ;;  %v1065_v63 = vld [vmem:[#allocation5 + $0x28] sm:$0xff] }
 0xb27   :  { %v1720_v13 = vadd.f32 %v2273_v7, %v1719_v6 }
 0xb29   :  { %v1724_v14 = vsel %vm1723_vm5, %v2273_v7, %v1720_v13 }
 0xb2a   :  { %v1729_v17 = vsel %vm1726_vm8, %v1728_v15, %v1724_v14  ;;  %v2138_v15 = vld [vmem:[%s2972_s6 + $0x68] sm:$0xff] }
 0xb2b   :  { %v1731_v18 = vmul.f32 %v2854_v47, %v1729_v17 }
 0xb31   :  { %v1601_v42 = vpop.permute.xlu1 %1600 }
 0xb32   :  { %1621 = vmatpush.msra.mxu1 %v1601_v42  ;;  %v2140_v42 = vld [vmem:[%s2972_s6 + $0x78] sm:$0xff] }
 0xb33   :  { %2167 = vmatmul.msk.f32.vlgmr.msra.gmra.mxu1 %vm180_vm1, %v1573_v62  ;;  %v2139_v62 = vld [vmem:[%s2972_s6 + $0x70] sm:$0xff]  ;;  %1945 = vmatpush.msrb.mxu0 %v2140_v42 }
 0xb34   :  { %1779 = vmatpush.msrb.mxu1 %v1759_v16  ;;  %v1890_v16 = vperm.slane %v2762_v30, 5 }
 0xb35   :  { %1946 = vmatpush.msrb.mxu0 %v2139_v62  ;;  %v2006_v62 = vperm.slane %v2762_v30, 7 }
 0xb37   :  { %1947 = vmatpush.msrb.mxu0 %v2138_v15 }
 0xb3b   :  { %2173 = vmatmul.msk.f32.vlgmr.msrb.gmra.mxu1 %vm180_vm1, %v1731_v18 }
 0xb62   :  { %v1305_v21 = vpop.f32.mrf.mxu1 }
 0xb80   :  { %v1438_v20 = vpop.f32.mrf.mxu0 }
 0xb81   :  { %1786 = vrot.lane.b32.xlu2 %v1438_v20, %s2367_s22 }
 0xb8d   :  { %v1597_v37 = vpop.f32.mrf.mxu0 }
 0xb8e   :  { %1794 = vrot.lane.b32.xlu0 %v1597_v37, %s2372_s15  ;;  %v2137_v37 = vld [vmem:[%s2972_s6 + $0x60] sm:$0xff] }
 0xb8f   :  { %1948 = vmatpush.msrb.mxu0 %v2137_v37 }
 0xb96   :  { %v1465_v23 = vpop.f32.mrf.mxu1 }
 0xb97   :  { %1788 = vrot.lane.b32.xlu2 %v1465_v23, %s2367_s22 }
 0xba1   :  { %v1755_v24 = vpop.f32.mrf.mxu0 }
 0xba2   :  { %1802 = vrot.lane.b32.xlu1 %v1755_v24, %s2373_s16 }
 0xbb0   :  { %v1623_v25 = vpop.f32.mrf.mxu1 }
 0xbb1   :  { %1796 = vrot.lane.b32.xlu0 %v1623_v25, %s2372_s15  ;;  %v2136_v25 = vld [vmem:[%s2972_s6 + $0x58] sm:$0xff] }
 0xbb2   :  { %1949 = vmatpush.msrb.mxu0 %v2136_v25 }
 0xbb8   :  { %v1781_v47 = vpop.f32.mrf.mxu1 }
 0xbb9   :  { %1804 = vrot.lane.b32.xlu1 %v1781_v47, %s2373_s16 }
 0xbdb   :  { %v1787_v28 = vpop.permute.xlu2 %1786 }
 0xbdc   :  { %v1808_v33 = vsel %vm180_vm1, %v1282_v19, %v1787_v28 }
 0xbf1   :  { %v1789_v9 = vpop.permute.xlu2 %1788 }
 0xbf2   :  { %v1809_v38 = vsel %vm180_vm1, %v1305_v21, %v1789_v9  ;;  %v1893_v21 = vperm.slane %v2762_v30, 6  ;;  %v2135_v9 = vld [vmem:[%s2972_s6 + $0x50] sm:$0xff] }
 0xbf3   :  { %1950 = vmatpush.msrb.mxu0 %v2135_v9 }
 0xc00   :  { %v1795_v32 = vpop.permute.xlu0 %1794 }
 0xc01   :  { %v1810_v35 = vsel %vm831_vm6, %v1808_v33, %v1795_v32 }
 0xc14   :  { %v1803_v4 = vpop.permute.xlu1 %1802 }
 0xc15   :  { %v1812_v36 = vsel %vm834_vm7, %v1810_v35, %v1803_v4 }
 0xc16   :  { %2174 = vmatmul.msk.f32.vlgmr.msrb.gmra.mxu2 %vm102_vm0, %v1812_v36 }
 0xc23   :  { %v1797_v34 = vpop.permute.xlu0 %1796 }
 0xc24   :  { %v1811_v39 = vsel %vm831_vm6, %v1809_v38, %v1797_v34  ;;  %v2134_v34 = vld [vmem:[%s2972_s6 + $0x48] sm:$0xff]  ;;  %v2133_v38 = vld [vmem:[%s2972_s6 + $0x40] sm:$0xff] }
 0xc25   :  { %1951 = vmatpush.msrb.mxu0 %v2134_v34 }
 0xc27   :  { %1952 = vmatpush.msrb.mxu0 %v2133_v38 }
 0xc2b   :  { %v1805_v40 = vpop.permute.xlu1 %1804 }
 0xc2c   :  { %v1813_v41 = vsel %vm834_vm7, %v1811_v39, %v1805_v40  ;;  %v2198_v39 = vld [vmem:[%s2974_s8 + $0x1] ss:$0 sm:$0xff] }
 0xc2d   :  { %2175 = vmatmul.msk.f32.gmra.mxu2 %vm102_vm0, %v1813_v41 }
 0xc99   :  { %v1838_v22 = vpop.f32.mrf.mxu2 }
 0xc9a   :  { %v1839_v45 = vadd.f32 %v1838_v22, %v1814_v43 }
 0xc9c   :  { %v1844_v46 = vadd.f32 %v1839_v45, %v2742_v51 }
 0xc9e   :  { %v1846_v48 = vsel %vm102_vm0, %v1844_v46, 0.0 }
 0xc9f   :  { %1847 = vadd.xlane.f32.xlu2 %v1846_v48  ;;  %v1930_v48 = vperm.slane %v2762_v30, 4 }
 0xcb0   :  { %v1841_v49 = vpop.f32.mrf.mxu2 }
 0xcb1   :  { %v1842_v52 = vadd.f32 %v1841_v49, %v1814_v43 }
 0xcb3   :  { %v1845_v53 = vadd.f32 %v1842_v52, %v2751_v61  ;;  %v1067_v61 = vld [vmem:[#allocation5 + $0x38] sm:$0xff] }
 0xcb4   :  { %1917 = vmatpush.msrb.mxu3 %v1067_v61 }
 0xcb5   :  { %v1849_v54 = vsel %vm102_vm0, %v1845_v53, 0.0 }
 0xcb6   :  { %1850 = vadd.xlane.f32.xlu0 %v1849_v54  ;;  %1918 = vmatpush.msrb.mxu3 %v1066_v12 }
 0xcb8   :  { %1919 = vmatpush.msrb.mxu3 %v1065_v63 }
 0xcba   :  { %1920 = vmatpush.msrb.mxu3 %v1064_v0 }
 0xd12   :  { %v1848_v55 = vpop.xlane.xlu2 %1847 }
 0xd13   :  { %v1852_v56 = vmul.f32 %v1848_v55, %v2646_v5 }
 0xd15   :  { %v1854_v7 = vsub.f32 %v1844_v46, %v1852_v56 }
 0xd17   :  { %v1856_v57 = vmul.f32 %v1854_v7, %v1854_v7 }
 0xd19   :  { %v1858_v58 = vsel %vm102_vm0, %v1856_v57, 0.0 }
 0xd1a   :  { %1859 = vadd.xlane.f32.xlu1 %v1858_v58 }
 0xd29   :  { %v1851_v31 = vpop.xlane.xlu0 %1850 }
 0xd2a   :  { %v1853_v51 = vmul.f32 %v1851_v31, %v2646_v5 }
 0xd2c   :  { %v1855_v59 = vsub.f32 %v1845_v53, %v1853_v51 }
 0xd2e   :  { %v1857_v60 = vmul.f32 %v1855_v59, %v1855_v59 }
 0xd30   :  { %v1861_v50 = vsel %vm102_vm0, %v1857_v60, 0.0 }
 0xd31   :  { %1862 = vadd.xlane.f32.xlu2 %v1861_v50 }
 0xd8d   :  { %v1860_v1 = vpop.xlane.xlu1 %1859 }
 0xd8e   :  { %v1864_v2 = vmul.f32 %v1860_v1, %v2646_v5 }
 0xd90   :  { %v1866_v6 = vadd.f32 1e-05, %v1864_v2 }
 0xd92   :  { %2274 = vrsqrt.f32 %v1866_v6  ;;  %vm1874_vm6 = vweird.f32 %v1866_v6 }
 0xd98   :  { %v2275_v8 = vpop.eup %2274 }
 0xd99   :  { %v1869_v44 = vmul.f32 %v2275_v8, %v1866_v6  ;;  %vm1875_vm1 = vweird.f32 %v2275_v8 }
 0xd9a   :  { %vm1876_vm7 = vmor %vm1874_vm6, %vm1875_vm1 }
 0xd9b   :  { %v1870_v13 = vmul.f32 %v2275_v8, %v1869_v44 }
 0xd9d   :  { %v1871_v10 = vmul.f32 0.5, %v1870_v13 }
 0xd9f   :  { %v1872_v11 = vsub.f32 1.5, %v1871_v10 }
 0xda1   :  { %v1873_v14 = vmul.f32 %v2275_v8, %v1872_v11 }
 0xda3   :  { %v1877_v17 = vsel %vm1876_vm7, %v2275_v8, %v1873_v14 }
 0xda4   :  { %v1863_v18 = vpop.xlane.xlu2 %1862  ;;  %v1888_v19 = vmul.f32 %v1877_v17, %v1854_v7 }
 0xda5   :  { %v1865_v20 = vmul.f32 %v1863_v18, %v2646_v5  ;;  %v2199_v18 = vld [vmem:[%s2973_s7 + $0x18] ss:$0 sm:$0xff] }
 0xda6   :  { %v1891_v23 = vmul.f32 %v1890_v16, %v1888_v19 }
 0xda7   :  { %v1867_v24 = vadd.f32 1e-05, %v1865_v20 }
 0xda8   :  { %v1894_v47 = vadd.f32 %v1893_v21, %v1891_v23 }
 0xda9   :  { %2276 = vrsqrt.f32 %v1867_v24  ;;  %vm1884_vm10 = vweird.f32 %v1867_v24 }
 0xdaa   :  { %2176 = vmatmul.msk.f32.vlgmr.msrb.gmra.mxu3 %vm102_vm0, %v1894_v47 }
 0xdaf   :  { %v2277_v27 = vpop.eup %2276 }
 0xdb0   :  { %v1879_v26 = vmul.f32 %v2277_v27, %v1867_v24  ;;  %vm1885_vm9 = vweird.f32 %v2277_v27 }
 0xdb1   :  { %vm1886_vm11 = vmor %vm1884_vm10, %vm1885_vm9 }
 0xdb2   :  { %v1880_v3 = vmul.f32 %v2277_v27, %v1879_v26 }
 0xdb4   :  { %v1881_v29 = vmul.f32 0.5, %v1880_v3 }
 0xdb6   :  { %v1882_v28 = vsub.f32 1.5, %v1881_v29 }
 0xdb8   :  { %v1883_v32 = vmul.f32 %v2277_v27, %v1882_v28 }
 0xdba   :  { %v1887_v33 = vsel %vm1886_vm11, %v2277_v27, %v1883_v32 }
 0xdbb   :  { %v1889_v35 = vmul.f32 %v1887_v33, %v1855_v59 }
 0xdbd   :  { %v1892_v4 = vmul.f32 %v1890_v16, %v1889_v35 }
 0xdbf   :  { %v1895_v36 = vadd.f32 %v1893_v21, %v1892_v4 }
 0xdc1   :  { %2177 = vmatmul.msk.f32.gmra.mxu3 %vm102_vm0, %v1895_v36 }
 0xe2d   :  { %v1922_v40 = vpop.f32.mrf.mxu3 }
 0xe2e   :  { %v1923_v41 = vadd.f32 %v2198_v39, %v1922_v40 }
 0xe30   :  { %v1928_v43 = vmax.f32 %v1923_v41, 0.0 }
 0xe32   :  { %2178 = vmatmul.msk.f32.vlgmr.msrb.gmra.mxu0 %vm961_vm15, %v1928_v43 }
 0xe44   :  { %v1925_v22 = vpop.f32.mrf.mxu3 }
 0xe45   :  { %v1926_v45 = vadd.f32 %v2198_v39, %v1925_v22 }
 0xe47   :  { %v1929_v46 = vmax.f32 %v1926_v45, 0.0 }
 0xe49   :  { %2179 = vmatmul.msk.f32.gmra.mxu0 %vm961_vm15, %v1929_v46 }
 0xeaf   :  { %v1954_v49 = vpop.f32.mrf.mxu0 }
 0xeb0   :  { %v1955_v52 = vadd.f32 %v1954_v49, %v1930_v48 }
 0xeb2   :  { %v1960_v53 = vadd.f32 %v1955_v52, %v1894_v47 }
 0xeb4   :  { %v1962_v54 = vsel %vm102_vm0, %v1960_v53, 0.0 }
 0xeb5   :  { %1963 = vadd.xlane.f32.xlu0 %v1962_v54 }
 0xec6   :  { %v1957_v55 = vpop.f32.mrf.mxu0 }
 0xec7   :  { %v1958_v56 = vadd.f32 %v1957_v55, %v1930_v48 }
 0xec9   :  { %v1961_v7 = vadd.f32 %v1958_v56, %v1895_v36 }
 0xecb   :  { %v1965_v57 = vsel %vm102_vm0, %v1961_v7, 0.0 }
 0xecc   :  { %1966 = vadd.xlane.f32.xlu1 %v1965_v57 }
 0xf28   :  { %v1964_v58 = vpop.xlane.xlu0 %1963 }
 0xf29   :  { %v1968_v31 = vmul.f32 %v1964_v58, %v2646_v5 }
 0xf2b   :  { %v1970_v51 = vsub.f32 %v1960_v53, %v1968_v31  ;;  %v2012_v53 = vld [vmem:[%s2975_s9] sm:$0x3]  ;;  %s2375_s9 = smov [#allocation7]  }
 0xf2c   :  { %v2057_v56 = vperm.slane %v2012_v53, 0  ;;  %s2069_s2 = sshll.u32 %s2375_s9, 4  ;;  %s2070_s2 = int_to_ptr.vmem [resolvable:$true] %s2069_s2 }
 0xf2d   :  { %v1972_v59 = vmul.f32 %v1970_v51, %v1970_v51 }
 0xf2f   :  { %v1974_v60 = vsel %vm102_vm0, %v1972_v59, 0.0 }
 0xf30   :  { %1975 = vadd.xlane.f32.xlu2 %v1974_v60 }
 0xf3f   :  { %v1967_v50 = vpop.xlane.xlu1 %1966 }
 0xf40   :  { %v1969_v61 = vmul.f32 %v1967_v50, %v2646_v5 }
 0xf42   :  { %v1971_v12 = vsub.f32 %v1961_v7, %v1969_v61 }
 0xf44   :  { %v1973_v63 = vmul.f32 %v1971_v12, %v1971_v12 }
 0xf46   :  { %v1977_v0 = vsel %vm102_vm0, %v1973_v63, 0.0 }
 0xf47   :  { %1978 = vadd.xlane.f32.xlu0 %v1977_v0 }
 0xfa3   :  { %v1976_v1 = vpop.xlane.xlu2 %1975 }
 0xfa4   :  { %v1980_v2 = vmul.f32 %v1976_v1, %v2646_v5 }
 0xfa6   :  { %v1982_v6 = vadd.f32 1e-05, %v1980_v2 }
 0xfa8   :  { %2278 = vrsqrt.f32 %v1982_v6  ;;  %vm1990_vm12 = vweird.f32 %v1982_v6 }
 0xfae   :  { %v2279_v8 = vpop.eup %2278 }
 0xfaf   :  { %v1985_v44 = vmul.f32 %v2279_v8, %v1982_v6  ;;  %vm1991_vm15 = vweird.f32 %v2279_v8 }
 0xfb0   :  { %vm1992_vm13 = vmor %vm1990_vm12, %vm1991_vm15 }
 0xfb1   :  { %v1986_v13 = vmul.f32 %v2279_v8, %v1985_v44 }
 0xfb3   :  { %v1987_v10 = vmul.f32 0.5, %v1986_v13 }
 0xfb5   :  { %v1988_v11 = vsub.f32 1.5, %v1987_v10 }
 0xfb7   :  { %v1989_v42 = vmul.f32 %v2279_v8, %v1988_v11 }
 0xfb9   :  { %v1993_v16 = vsel %vm1992_vm13, %v2279_v8, %v1989_v42 }
 0xfba   :  { %v1979_v14 = vpop.xlane.xlu0 %1978  ;;  %v2004_v17 = vmul.f32 %v1993_v16, %v1970_v51  ;;  %v2060_v51 = vperm.slane %v2012_v53, 1 }
 0xfbb   :  { %v1981_v15 = vmul.f32 %v1979_v14, %v2646_v5 }
 0xfbc   :  { %v2007_v20 = vmul.f32 %v2006_v62, %v2004_v17 }
 0xfbd   :  { %v1983_v19 = vadd.f32 1e-05, %v1981_v15 }
 0xfbe   :  { %v2010_v21 = vadd.f32 %v2199_v18, %v2007_v20 }
 0xfbf   :  { %2280 = vrsqrt.f32 %v1983_v19  ;;  %vm2000_vm2 = vweird.f32 %v1983_v19 }
 0xfc0   :  { %v2013_v37 = vsel %vm102_vm0, %v2010_v21, 0.0 }
 0xfc1   :  { %2014 = vadd.xlane.f32.xlu1 %v2013_v37 }
 0xfc5   :  { %v2281_v23 = vpop.eup %2280 }
 0xfc6   :  { %v1995_v24 = vmul.f32 %v2281_v23, %v1983_v19  ;;  %vm2001_vm14 = vweird.f32 %v2281_v23 }
 0xfc7   :  { %vm2002_vm3 = vmor %vm2000_vm2, %vm2001_vm14 }
 0xfc8   :  { %v1996_v25 = vmul.f32 %v2281_v23, %v1995_v24 }
 0xfca   :  { %v1997_v30 = vmul.f32 0.5, %v1996_v25 }
 0xfcc   :  { %v1998_v47 = vsub.f32 1.5, %v1997_v30 }
 0xfce   :  { %v1999_v27 = vmul.f32 %v2281_v23, %v1998_v47 }
 0xfd0   :  { %v2003_v26 = vsel %vm2002_vm3, %v2281_v23, %v1999_v27 }
 0xfd1   :  { %v2005_v3 = vmul.f32 %v2003_v26, %v1971_v12 }
 0xfd3   :  { %v2008_v29 = vmul.f32 %v2006_v62, %v2005_v3 }
 0xfd5   :  { %v2011_v28 = vadd.f32 %v2199_v18, %v2008_v29 }
 0xfd7   :  { %v2016_v32 = vsel %vm102_vm0, %v2011_v28, 0.0 }
 0xfd8   :  { %2017 = vadd.xlane.f32.xlu2 %v2016_v32 }
0x1034   :  { %v2015_v33 = vpop.xlane.xlu1 %2014 }
0x1035   :  { %v2019_v35 = vmul.f32 %v2015_v33, %v2646_v5 }
0x1037   :  { %v2021_v4 = vsub.f32 %v2010_v21, %v2019_v35 }
0x1039   :  { %v2023_v36 = vmul.f32 %v2021_v4, %v2021_v4 }
0x103b   :  { %v2025_v9 = vsel %vm102_vm0, %v2023_v36, 0.0 }
0x103c   :  { %2026 = vadd.xlane.f32.xlu0 %v2025_v9 }
0x104b   :  { %v2018_v34 = vpop.xlane.xlu2 %2017 }
0x104c   :  { %v2020_v38 = vmul.f32 %v2018_v34, %v2646_v5 }
0x104e   :  { %v2022_v39 = vsub.f32 %v2011_v28, %v2020_v38 }
0x1050   :  { %v2024_v40 = vmul.f32 %v2022_v39, %v2022_v39 }
0x1052   :  { %v2028_v41 = vsel %vm102_vm0, %v2024_v40, 0.0 }
0x1053   :  { %2029 = vadd.xlane.f32.xlu1 %v2028_v41 }
0x10af   :  { %v2027_v43 = vpop.xlane.xlu0 %2026 }
0x10b0   :  { %v2031_v22 = vmul.f32 %v2027_v43, %v2646_v5 }
0x10b2   :  { %v2033_v45 = vadd.f32 1e-05, %v2031_v22 }
0x10b4   :  { %2282 = vrsqrt.f32 %v2033_v45  ;;  %vm2041_vm5 = vweird.f32 %v2033_v45 }
0x10ba   :  { %v2283_v46 = vpop.eup %2282 }
0x10bb   :  { %v2036_v48 = vmul.f32 %v2283_v46, %v2033_v45  ;;  %vm2042_vm4 = vweird.f32 %v2283_v46 }
0x10bc   :  { %vm2043_vm8 = vmor %vm2041_vm5, %vm2042_vm4 }
0x10bd   :  { %v2037_v49 = vmul.f32 %v2283_v46, %v2036_v48 }
0x10bf   :  { %v2038_v52 = vmul.f32 0.5, %v2037_v49 }
0x10c1   :  { %v2039_v54 = vsub.f32 1.5, %v2038_v52 }
0x10c3   :  { %v2040_v55 = vmul.f32 %v2283_v46, %v2039_v54 }
0x10c5   :  { %v2044_v7 = vsel %vm2043_vm8, %v2283_v46, %v2040_v55 }
0x10c6   :  { %v2030_v57 = vpop.xlane.xlu1 %2029  ;;  %v2055_v58 = vmul.f32 %v2044_v7, %v2021_v4 }
0x10c7   :  { %v2032_v31 = vmul.f32 %v2030_v57, %v2646_v5 }
0x10c8   :  { %v2058_v59 = vmul.f32 %v2057_v56, %v2055_v58 }
0x10c9   :  { %v2034_v60 = vadd.f32 1e-05, %v2032_v31 }
0x10ca   :  { %v2061_v50 = vadd.f32 %v2060_v51, %v2058_v59 }
0x10cb   :  { %2284 = vrsqrt.f32 %v2034_v60  ;;  %vm2051_vm6 = vweird.f32 %v2034_v60 }
0x10cc   :  { %2063 = vst.msk [vmem:[#allocation7] sm:$0xff] %vm102_vm0, %v2061_v50 }
0x10d1   :  { %v2285_v61 = vpop.eup %2284 }
0x10d2   :  { %v2046_v12 = vmul.f32 %v2285_v61, %v2034_v60  ;;  %vm2052_vm1 = vweird.f32 %v2285_v61 }
0x10d3   :  { %vm2053_vm7 = vmor %vm2051_vm6, %vm2052_vm1 }
0x10d4   :  { %v2047_v63 = vmul.f32 %v2285_v61, %v2046_v12 }
0x10d6   :  { %v2048_v0 = vmul.f32 0.5, %v2047_v63 }
0x10d8   :  { %v2049_v1 = vsub.f32 1.5, %v2048_v0 }
0x10da   :  { %v2050_v2 = vmul.f32 %v2285_v61, %v2049_v1 }
0x10dc   :  { %v2054_v6 = vsel %vm2053_vm7, %v2285_v61, %v2050_v2 }
0x10dd   :  { %v2056_v8 = vmul.f32 %v2054_v6, %v2022_v39 }
0x10df   :  { %v2059_v5 = vmul.f32 %v2057_v56, %v2056_v8 }
0x10e1   :  { %v2062_v44 = vadd.f32 %v2060_v51, %v2059_v5 }
0x10e3   :  { %2064 = vst.msk [vmem:[#allocation7 + $0x8] sm:$0xff] %vm102_vm0, %v2062_v44 }
0x10e4   :  { %2077 = dma.vmem_to_hbm [thread:$0]  %s2070_s2, 256, %s2072_s28, [#allocation4], %s2366_s21, %s2366_s21, %s2367_s22  }
0x10e5   :  { %2363 = dma.done.wait [#allocation4], 256  }
0x10e6   :  { %2364 = vsyncadd [#allocation4], 4294967040 }
0x10e7   :  { %2082 = vsyncpa [#allocation3], 1 }
0x10e8   :  { %2083 = vsyncpa [#allocation6], 1 }
0x10e9   :  { %2084 = vsyncpa [#allocation4], 1 }

</bundles_post_ra>
